<compile_context>
chip_gen: v5e
topology: v5e:2x2
jax: 0.10.0
libtpu: 0.0.40
codegen_flags: <defaults>
</compile_context>

<pallas_src>
import jax
import jax.numpy as jnp
from jax import lax
from jax.experimental import pallas as pl
from jax.experimental.pallas import tpu as pltpu


def _round_up(x, m):
    return (x + m - 1) // m * m


# ---------------------------------------------------------------------------
# Kernel A/B: conv (matmul over pool-corner-grouped patches) + bias + 2x2
#             max-pool + ReLU, fully fused.
#
#   o(tco, tmq) = relu( max_{q=0..3} ( W(tco,Kp) @ P[q](Kp,tmq) + b ) )
# ---------------------------------------------------------------------------
def _conv_pool_relu_kernel(w_ref, p_ref, b_ref, o_ref):
    w = w_ref[...]                                    # (tco, Kp)
    b = b_ref[...]                                    # (tco, 1) -> broadcast
    pooled = None
    for q in range(4):                                # static unroll: 4 corners
        acc = jnp.dot(w, p_ref[q], preferred_element_type=jnp.float32) + b
        pooled = acc if pooled is None else jnp.maximum(pooled, acc)
    o_ref[...] = jnp.maximum(pooled, 0.0).astype(o_ref.dtype)


def _pool_grouped_patches(x_cm, k):
    """im2col with columns grouped by 2x2 pool corner.

    x_cm: (Cin, B, H, W) channel-major activations.
    Returns (4, Cin*k*k, B*Hp*Wp) with
      [q, c*k*k + kh*k + kw, b*Hp*Wp + hp*Wp + wp]
        = x_cm[c, b, 2*hp + dh + kh, 2*wp + dw + kw],   q = 2*dh + dw.
    Row order matches w.reshape(Cout, Cin*k*k); column order (b, hp, wp) is the
    channel-major layout consumed by the next layer.
    """
    C, B, H, W = x_cm.shape
    Ho, Wo = H - k + 1, W - k + 1
    Hp, Wp = Ho // 2, Wo // 2
    # One slice per filter tap (k*k), all channels at once.
    taps = jnp.stack([x_cm[:, :, kh:kh + Ho, kw:kw + Wo]
                      for kh in range(k) for kw in range(k)], axis=0)
    taps = jnp.transpose(taps, (1, 0, 2, 3, 4)).reshape(C * k * k, B, Ho, Wo)
    corners = jnp.stack([taps[:, :, dh::2, dw::2]
                         for dh in (0, 1) for dw in (0, 1)], axis=0)
    return corners.reshape(4, C * k * k, B * Hp * Wp)


def _pick_m_tiling(Mq, tmq_max=512):
    """Lane-dense tiling of the pooled-position axis: grid >= 2 when possible
    (keeps both v7x TensorCores busy) but few, large tiles so single-TC
    v5e/v6e only pay a couple of ~0.35us grid steps."""
    Mqp = _round_up(Mq, 128)
    tmq = min(tmq_max, Mqp)
    if Mqp > 128 and Mqp // tmq < 2:
        tmq = _round_up(Mqp // 2, 128)
    Mqp = _round_up(Mqp, tmq)
    return Mqp, tmq


def conv_relu_pool(x_cm, w, b, *, tmq_max=512, tco=8):
    """Valid conv (stride 1) + bias + ReLU + 2x2/2 max-pool, channel-major
    in/out, as ONE Pallas kernel launch."""
    Cin, B, H, W = x_cm.shape
    Cout, Cin2, k, k2 = w.shape
    assert Cin == Cin2 and k == k2
    Ho, Wo = H - k + 1, W - k + 1
    assert Ho % 2 == 0 and Wo % 2 == 0, "2x2 pool needs even conv output"
    Hp, Wp = Ho // 2, Wo // 2

    K = Cin * k * k
    Kp = _round_up(K, 8)                       # sublane-aligned contraction dim
    Mq = B * Hp * Wp
    Mqp, tmq = _pick_m_tiling(Mq, tmq_max)
    Coutp = _round_up(Cout, tco)               # sublane-dense output rows

    patches = _pool_grouped_patches(x_cm, k)                       # (4, K, Mq)
    patches = jnp.pad(patches, ((0, 0), (0, Kp - K), (0, Mqp - Mq)))
    wmat = jnp.pad(w.reshape(Cout, K), ((0, Coutp - Cout), (0, Kp - K)))
    bcol = jnp.pad(b.reshape(Cout, 1), ((0, Coutp - Cout), (0, 0)))

    grid = (Mqp // tmq, Coutp // tco)          # (pooled-pos tiles, Cout tiles)
    out = pl.pallas_call(
        _conv_pool_relu_kernel,
        out_shape=jax.ShapeDtypeStruct((Coutp, Mqp), jnp.float32),
        grid=grid,
        in_specs=[
            pl.BlockSpec((tco, Kp), lambda mi, ci: (ci, 0)),        # weights
            pl.BlockSpec((4, Kp, tmq), lambda mi, ci: (0, 0, mi)),  # patches
            pl.BlockSpec((tco, 1), lambda mi, ci: (ci, 0)),         # bias
        ],
        out_specs=pl.BlockSpec((tco, tmq), lambda mi, ci: (ci, mi)),
        compiler_params=pltpu.CompilerParams(
            dimension_semantics=("parallel", "parallel")),
    )(wmat, patches, bcol)
    # Drop Cout / pooled-position zero padding; back to channel-major 4D.
    return out[:Cout, :Mq].reshape(Cout, B, Hp, Wp)


# ---------------------------------------------------------------------------
# Kernel C: fused fc1 -> relu -> fc2 -> relu -> fc3 (all dims 128-lane padded)
# ---------------------------------------------------------------------------
def _fc_fused_kernel(x_ref, w1_ref, b1_ref, w2_ref, b2_ref, w3_ref, b3_ref,
                     o_ref):
    h = jnp.dot(x_ref[...], w1_ref[...],
                preferred_element_type=jnp.float32) + b1_ref[...]
    h = jnp.maximum(h, 0.0)
    h = jnp.dot(h, w2_ref[...],
                preferred_element_type=jnp.float32) + b2_ref[...]
    h = jnp.maximum(h, 0.0)
    o = jnp.dot(h, w3_ref[...],
                preferred_element_type=jnp.float32) + b3_ref[...]
    o_ref[...] = o.astype(o_ref.dtype)


def fc_stack(flat, p):
    """(B, 400) -> (B, 10).  Weights stay VMEM-resident; intermediates are
    lane-dense 128-wide; batch is tiled so any B fits the v7x VMEM budget."""
    B, F = flat.shape
    L1, L2, NO = p["fc1_b"].shape[0], p["fc2_b"].shape[0], p["fc3_b"].shape[0]
    Fp, L1p, L2p, NOp = (_round_up(v, 128) for v in (F, L1, L2, NO))
    tb = min(128, _round_up(B, 8))
    Bp = _round_up(B, tb)

    x = jnp.pad(flat, ((0, Bp - B), (0, Fp - F)))
    w1 = jnp.pad(p["fc1_w"], ((0, Fp - F), (0, L1p - L1)))
    b1 = jnp.pad(p["fc1_b"], (0, L1p - L1)).reshape(1, L1p)
    w2 = jnp.pad(p["fc2_w"], ((0, L1p - L1), (0, L2p - L2)))
    b2 = jnp.pad(p["fc2_b"], (0, L2p - L2)).reshape(1, L2p)
    w3 = jnp.pad(p["fc3_w"], ((0, L2p - L2), (0, NOp - NO)))
    b3 = jnp.pad(p["fc3_b"], (0, NOp - NO)).reshape(1, NOp)

    out = pl.pallas_call(
        _fc_fused_kernel,
        out_shape=jax.ShapeDtypeStruct((Bp, NOp), jnp.float32),
        grid=(Bp // tb,),
        in_specs=[
            pl.BlockSpec((tb, Fp), lambda i: (i, 0)),        # activations
            pl.BlockSpec((Fp, L1p), lambda i: (0, 0)),       # fc1 w (resident)
            pl.BlockSpec((1, L1p), lambda i: (0, 0)),
            pl.BlockSpec((L1p, L2p), lambda i: (0, 0)),      # fc2 w (resident)
            pl.BlockSpec((1, L2p), lambda i: (0, 0)),
            pl.BlockSpec((L2p, NOp), lambda i: (0, 0)),      # fc3 w (resident)
            pl.BlockSpec((1, NOp), lambda i: (0, 0)),
        ],
        out_specs=pl.BlockSpec((tb, NOp), lambda i: (i, 0)),
        compiler_params=pltpu.CompilerParams(
            dimension_semantics=("parallel",)),
    )(x, w1, b1, w2, b2, w3, b3)
    return out[:B, :NO]


# ---------------------------------------------------------------------------
# The Net forward pass (LeNet-style, l1=120, l2=84)
# ---------------------------------------------------------------------------
def net_forward(x, p):
    # x: (B, 3, 32, 32) NCHW (PyTorch layout)
    B = x.shape[0]
    xc = jnp.transpose(x, (1, 0, 2, 3))                           # (3,B,32,32)
    y = conv_relu_pool(xc, p["conv1_w"], p["conv1_b"])            # (6,B,14,14)
    y = conv_relu_pool(y, p["conv2_w"], p["conv2_b"])             # (16,B,5,5)
    # torch.flatten(x, 1): per-batch features in (c, hp, wp) order.
    flat = jnp.transpose(y, (1, 0, 2, 3)).reshape(B, -1)          # (B, 400)
    return fc_stack(flat, p)                                      # (B, 10)


# Pure-JAX reference for the correctness check.
def net_reference(x, p):
    def conv(x, w, b):
        y = lax.conv_general_dilated(
            x, w, (1, 1), "VALID", dimension_numbers=("NCHW", "OIHW", "NCHW"))
        return jax.nn.relu(y + b.reshape(1, -1, 1, 1))

    def pool(x):
        return lax.reduce_window(x, -jnp.inf, lax.max,
                                 (1, 1, 2, 2), (1, 1, 2, 2), "VALID")

    x = pool(conv(x, p["conv1_w"], p["conv1_b"]))
    x = pool(conv(x, p["conv2_w"], p["conv2_b"]))
    x = x.reshape(x.shape[0], -1)
    x = jax.nn.relu(x @ p["fc1_w"] + p["fc1_b"])
    x = jax.nn.relu(x @ p["fc2_w"] + p["fc2_b"])
    return x @ p["fc3_w"] + p["fc3_b"]


def init_params(key, l1=120, l2=84):
    def uni(k, shape, fan_in):
        bound = 1.0 / float(fan_in) ** 0.5
        return jax.random.uniform(k, shape, jnp.float32, -bound, bound)

    ks = jax.random.split(key, 10)
    return {
        "conv1_w": uni(ks[0], (6, 3, 5, 5), 3 * 5 * 5),
        "conv1_b": uni(ks[1], (6,), 3 * 5 * 5),
        "conv2_w": uni(ks[2], (16, 6, 5, 5), 6 * 5 * 5),
        "conv2_b": uni(ks[3], (16,), 6 * 5 * 5),
        # Linear weights stored as (in, out); equivalent to torch's x @ W.T + b.
        "fc1_w": uni(ks[4], (16 * 5 * 5, l1), 16 * 5 * 5),
        "fc1_b": uni(ks[5], (l1,), 16 * 5 * 5),
        "fc2_w": uni(ks[6], (l1, l2), l1),
        "fc2_b": uni(ks[7], (l2,), l1),
        "fc3_w": uni(ks[8], (l2, 10), l2),
        "fc3_b": uni(ks[9], (10,), l2),
    }


if __name__ == "__main__":
    key = jax.random.PRNGKey(0)
    k_x, k_p = jax.random.split(key)
    # 32x32 spatial is required so that flatten yields 16*5*5 = 400 features.
    x = jax.random.normal(k_x, (2, 3, 32, 32), jnp.float32)
    params = init_params(k_p)

    out = jax.block_until_ready(jax.jit(net_forward)(x, params))
    assert out.shape == (2, 10), out.shape

    ref = jax.block_until_ready(jax.jit(net_reference)(x, params))
    assert jnp.allclose(out, ref, rtol=2e-4, atol=2e-4), \
        float(jnp.abs(out - ref).max())

    print("KERNEL_OK")
</pallas_src>

<mosaic_0001>
module attributes {stable_mosaic.version = 11 : i64} {
  func.func @_conv_pool_relu_kernel(%arg0: i32, %arg1: i32, %arg2: memref<8x80xf32, #tpu.memory_space<vmem>>, %arg3: memref<4x80x256xf32, #tpu.memory_space<vmem>>, %arg4: memref<8x1xf32, #tpu.memory_space<vmem>>, %arg5: memref<8x256xf32, #tpu.memory_space<vmem>>) attributes {dimension_semantics = [#tpu.dimension_semantics<parallel>, #tpu.dimension_semantics<parallel>], iteration_bounds = array<i64: 2, 1>, scalar_prefetch = 0 : i64, scratch_operands = 0 : i64, tpu.core_type = #tpu.core_type<tc>, window_params = [{transform_indices = @transform_0, window_bounds = array<i64: 8, 80>}, {transform_indices = @transform_1, window_bounds = array<i64: 4, 80, 256>}, {transform_indices = @transform_2, window_bounds = array<i64: 8, 1>}, {transform_indices = @transform_3, window_bounds = array<i64: 8, 256>}]} {
    %c0 = arith.constant 0 : index
    %c0_0 = arith.constant 0 : index
    %0 = vector.load %arg2[%c0, %c0_0] : memref<8x80xf32, #tpu.memory_space<vmem>>, vector<8x80xf32>
    %c0_1 = arith.constant 0 : index
    %c0_2 = arith.constant 0 : index
    %1 = vector.load %arg4[%c0_1, %c0_2] : memref<8x1xf32, #tpu.memory_space<vmem>>, vector<8x1xf32>
    %c0_3 = arith.constant 0 : index
    %c0_4 = arith.constant 0 : index
    %c0_5 = arith.constant 0 : index
    %2 = vector.load %arg3[%c0_3, %c0_4, %c0_5] : memref<4x80x256xf32, #tpu.memory_space<vmem>>, vector<1x80x256xf32>
    %3 = vector.shape_cast %2 : vector<1x80x256xf32> to vector<80x256xf32>
    %cst = arith.constant dense<0.000000e+00> : vector<8x256xf32>
    %4 = tpu.matmul %0, %3, %cst {dimension_numbers = #tpu.dot_dimension_numbers<[1], [0], [0], [1], [0, 0, 1, 1], [], []>} : vector<8x80xf32>, vector<80x256xf32>, vector<8x256xf32> -> vector<8x256xf32>
    %5 = vector.broadcast %1 : vector<8x1xf32> to vector<8x256xf32>
    %6 = arith.addf %4, %5 : vector<8x256xf32>
    %c1 = arith.constant 1 : index
    %c0_6 = arith.constant 0 : index
    %c0_7 = arith.constant 0 : index
    %7 = vector.load %arg3[%c1, %c0_6, %c0_7] : memref<4x80x256xf32, #tpu.memory_space<vmem>>, vector<1x80x256xf32>
    %8 = vector.shape_cast %7 : vector<1x80x256xf32> to vector<80x256xf32>
    %cst_8 = arith.constant dense<0.000000e+00> : vector<8x256xf32>
    %9 = tpu.matmul %0, %8, %cst_8 {dimension_numbers = #tpu.dot_dimension_numbers<[1], [0], [0], [1], [0, 0, 1, 1], [], []>} : vector<8x80xf32>, vector<80x256xf32>, vector<8x256xf32> -> vector<8x256xf32>
    %10 = vector.broadcast %1 : vector<8x1xf32> to vector<8x256xf32>
    %11 = arith.addf %9, %10 : vector<8x256xf32>
    %12 = arith.maximumf %6, %11 : vector<8x256xf32>
    %c2 = arith.constant 2 : index
    %c0_9 = arith.constant 0 : index
    %c0_10 = arith.constant 0 : index
    %13 = vector.load %arg3[%c2, %c0_9, %c0_10] : memref<4x80x256xf32, #tpu.memory_space<vmem>>, vector<1x80x256xf32>
    %14 = vector.shape_cast %13 : vector<1x80x256xf32> to vector<80x256xf32>
    %cst_11 = arith.constant dense<0.000000e+00> : vector<8x256xf32>
    %15 = tpu.matmul %0, %14, %cst_11 {dimension_numbers = #tpu.dot_dimension_numbers<[1], [0], [0], [1], [0, 0, 1, 1], [], []>} : vector<8x80xf32>, vector<80x256xf32>, vector<8x256xf32> -> vector<8x256xf32>
    %16 = vector.broadcast %1 : vector<8x1xf32> to vector<8x256xf32>
    %17 = arith.addf %15, %16 : vector<8x256xf32>
    %18 = arith.maximumf %12, %17 : vector<8x256xf32>
    %c3 = arith.constant 3 : index
    %c0_12 = arith.constant 0 : index
    %c0_13 = arith.constant 0 : index
    %19 = vector.load %arg3[%c3, %c0_12, %c0_13] : memref<4x80x256xf32, #tpu.memory_space<vmem>>, vector<1x80x256xf32>
    %20 = vector.shape_cast %19 : vector<1x80x256xf32> to vector<80x256xf32>
    %cst_14 = arith.constant dense<0.000000e+00> : vector<8x256xf32>
    %21 = tpu.matmul %0, %20, %cst_14 {dimension_numbers = #tpu.dot_dimension_numbers<[1], [0], [0], [1], [0, 0, 1, 1], [], []>} : vector<8x80xf32>, vector<80x256xf32>, vector<8x256xf32> -> vector<8x256xf32>
    %22 = vector.broadcast %1 : vector<8x1xf32> to vector<8x256xf32>
    %23 = arith.addf %21, %22 : vector<8x256xf32>
    %24 = arith.maximumf %18, %23 : vector<8x256xf32>
    %cst_15 = arith.constant 0.000000e+00 : f32
    %25 = vector.broadcast %cst_15 : f32 to vector<8x256xf32>
    %26 = arith.maximumf %24, %25 : vector<8x256xf32>
    %c0_16 = arith.constant 0 : index
    %c0_17 = arith.constant 0 : index
    %27 = vector.load %arg5[%c0_16, %c0_17] : memref<8x256xf32, #tpu.memory_space<vmem>>, vector<8x256xf32>
    tpu.vector_store %arg5[%c0_16, %c0_17], %26 {strides = array<i32>} : memref<8x256xf32, #tpu.memory_space<vmem>>, vector<8x256xf32>,
    return
  }
  func.func @transform_0(%arg0: i32, %arg1: i32) -> (i32, i32) {
    %c0_i32 = arith.constant 0 : i32
    %c0_i32_0 = arith.constant 0 : i32
    return %arg1, %c0_i32 : i32, i32
  }
  func.func @transform_1(%arg0: i32, %arg1: i32) -> (i32, i32, i32) {
    %c0_i32 = arith.constant 0 : i32
    %c0_i32_0 = arith.constant 0 : i32
    %c0_i32_1 = arith.constant 0 : i32
    return %c0_i32, %c0_i32_0, %arg0 : i32, i32, i32
  }
  func.func @transform_2(%arg0: i32, %arg1: i32) -> (i32, i32) {
    %c0_i32 = arith.constant 0 : i32
    %c0_i32_0 = arith.constant 0 : i32
    return %arg1, %c0_i32 : i32, i32
  }
  func.func @transform_3(%arg0: i32, %arg1: i32) -> (i32, i32) {
    %c0_i32 = arith.constant 0 : i32
    return %arg1, %arg0 : i32, i32
  }
}

module attributes {stable_mosaic.version = 11 : i64} {
  func.func @_conv_pool_relu_kernel(%arg0: i32, %arg1: i32, %arg2: memref<8x152xf32, #tpu.memory_space<vmem>>, %arg3: memref<4x152x128xf32, #tpu.memory_space<vmem>>, %arg4: memref<8x1xf32, #tpu.memory_space<vmem>>, %arg5: memref<8x128xf32, #tpu.memory_space<vmem>>) attributes {dimension_semantics = [#tpu.dimension_semantics<parallel>, #tpu.dimension_semantics<parallel>], iteration_bounds = array<i64: 1, 2>, scalar_prefetch = 0 : i64, scratch_operands = 0 : i64, tpu.core_type = #tpu.core_type<tc>, window_params = [{transform_indices = @transform_0, window_bounds = array<i64: 8, 152>}, {transform_indices = @transform_1, window_bounds = array<i64: 4, 152, 128>}, {transform_indices = @transform_2, window_bounds = array<i64: 8, 1>}, {transform_indices = @transform_3, window_bounds = array<i64: 8, 128>}]} {
    %c0 = arith.constant 0 : index
    %c0_0 = arith.constant 0 : index
    %0 = vector.load %arg2[%c0, %c0_0] : memref<8x152xf32, #tpu.memory_space<vmem>>, vector<8x152xf32>
    %c0_1 = arith.constant 0 : index
    %c0_2 = arith.constant 0 : index
    %1 = vector.load %arg4[%c0_1, %c0_2] : memref<8x1xf32, #tpu.memory_space<vmem>>, vector<8x1xf32>
    %c0_3 = arith.constant 0 : index
    %c0_4 = arith.constant 0 : index
    %c0_5 = arith.constant 0 : index
    %2 = vector.load %arg3[%c0_3, %c0_4, %c0_5] : memref<4x152x128xf32, #tpu.memory_space<vmem>>, vector<1x152x128xf32>
    %3 = vector.shape_cast %2 : vector<1x152x128xf32> to vector<152x128xf32>
    %cst = arith.constant dense<0.000000e+00> : vector<8x128xf32>
    %4 = tpu.matmul %0, %3, %cst {dimension_numbers = #tpu.dot_dimension_numbers<[1], [0], [0], [1], [0, 0, 1, 1], [], []>} : vector<8x152xf32>, vector<152x128xf32>, vector<8x128xf32> -> vector<8x128xf32>
    %5 = vector.broadcast %1 : vector<8x1xf32> to vector<8x128xf32>
    %6 = arith.addf %4, %5 : vector<8x128xf32>
    %c1 = arith.constant 1 : index
    %c0_6 = arith.constant 0 : index
    %c0_7 = arith.constant 0 : index
    %7 = vector.load %arg3[%c1, %c0_6, %c0_7] : memref<4x152x128xf32, #tpu.memory_space<vmem>>, vector<1x152x128xf32>
    %8 = vector.shape_cast %7 : vector<1x152x128xf32> to vector<152x128xf32>
    %cst_8 = arith.constant dense<0.000000e+00> : vector<8x128xf32>
    %9 = tpu.matmul %0, %8, %cst_8 {dimension_numbers = #tpu.dot_dimension_numbers<[1], [0], [0], [1], [0, 0, 1, 1], [], []>} : vector<8x152xf32>, vector<152x128xf32>, vector<8x128xf32> -> vector<8x128xf32>
    %10 = vector.broadcast %1 : vector<8x1xf32> to vector<8x128xf32>
    %11 = arith.addf %9, %10 : vector<8x128xf32>
    %12 = arith.maximumf %6, %11 : vector<8x128xf32>
    %c2 = arith.constant 2 : index
    %c0_9 = arith.constant 0 : index
    %c0_10 = arith.constant 0 : index
    %13 = vector.load %arg3[%c2, %c0_9, %c0_10] : memref<4x152x128xf32, #tpu.memory_space<vmem>>, vector<1x152x128xf32>
    %14 = vector.shape_cast %13 : vector<1x152x128xf32> to vector<152x128xf32>
    %cst_11 = arith.constant dense<0.000000e+00> : vector<8x128xf32>
    %15 = tpu.matmul %0, %14, %cst_11 {dimension_numbers = #tpu.dot_dimension_numbers<[1], [0], [0], [1], [0, 0, 1, 1], [], []>} : vector<8x152xf32>, vector<152x128xf32>, vector<8x128xf32> -> vector<8x128xf32>
    %16 = vector.broadcast %1 : vector<8x1xf32> to vector<8x128xf32>
    %17 = arith.addf %15, %16 : vector<8x128xf32>
    %18 = arith.maximumf %12, %17 : vector<8x128xf32>
    %c3 = arith.constant 3 : index
    %c0_12 = arith.constant 0 : index
    %c0_13 = arith.constant 0 : index
    %19 = vector.load %arg3[%c3, %c0_12, %c0_13] : memref<4x152x128xf32, #tpu.memory_space<vmem>>, vector<1x152x128xf32>
    %20 = vector.shape_cast %19 : vector<1x152x128xf32> to vector<152x128xf32>
    %cst_14 = arith.constant dense<0.000000e+00> : vector<8x128xf32>
    %21 = tpu.matmul %0, %20, %cst_14 {dimension_numbers = #tpu.dot_dimension_numbers<[1], [0], [0], [1], [0, 0, 1, 1], [], []>} : vector<8x152xf32>, vector<152x128xf32>, vector<8x128xf32> -> vector<8x128xf32>
    %22 = vector.broadcast %1 : vector<8x1xf32> to vector<8x128xf32>
    %23 = arith.addf %21, %22 : vector<8x128xf32>
    %24 = arith.maximumf %18, %23 : vector<8x128xf32>
    %cst_15 = arith.constant 0.000000e+00 : f32
    %25 = vector.broadcast %cst_15 : f32 to vector<8x128xf32>
    %26 = arith.maximumf %24, %25 : vector<8x128xf32>
    %c0_16 = arith.constant 0 : index
    %c0_17 = arith.constant 0 : index
    %27 = vector.load %arg5[%c0_16, %c0_17] : memref<8x128xf32, #tpu.memory_space<vmem>>, vector<8x128xf32>
    tpu.vector_store %arg5[%c0_16, %c0_17], %26 {strides = array<i32>} : memref<8x128xf32, #tpu.memory_space<vmem>>, vector<8x128xf32>,
    return
  }
  func.func @transform_0(%arg0: i32, %arg1: i32) -> (i32, i32) {
    %c0_i32 = arith.constant 0 : i32
    %c0_i32_0 = arith.constant 0 : i32
    return %arg1, %c0_i32 : i32, i32
  }
  func.func @transform_1(%arg0: i32, %arg1: i32) -> (i32, i32, i32) {
    %c0_i32 = arith.constant 0 : i32
    %c0_i32_0 = arith.constant 0 : i32
    %c0_i32_1 = arith.constant 0 : i32
    return %c0_i32, %c0_i32_0, %arg0 : i32, i32, i32
  }
  func.func @transform_2(%arg0: i32, %arg1: i32) -> (i32, i32) {
    %c0_i32 = arith.constant 0 : i32
    %c0_i32_0 = arith.constant 0 : i32
    return %arg1, %c0_i32 : i32, i32
  }
  func.func @transform_3(%arg0: i32, %arg1: i32) -> (i32, i32) {
    %c0_i32 = arith.constant 0 : i32
    return %arg1, %arg0 : i32, i32
  }
}

module attributes {stable_mosaic.version = 11 : i64} {
  func.func @_fc_fused_kernel(%arg0: i32, %arg1: memref<8x512xf32, #tpu.memory_space<vmem>>, %arg2: memref<512x128xf32, #tpu.memory_space<vmem>>, %arg3: memref<1x128xf32, #tpu.memory_space<vmem>>, %arg4: memref<128x128xf32, #tpu.memory_space<vmem>>, %arg5: memref<1x128xf32, #tpu.memory_space<vmem>>, %arg6: memref<128x128xf32, #tpu.memory_space<vmem>>, %arg7: memref<1x128xf32, #tpu.memory_space<vmem>>, %arg8: memref<8x128xf32, #tpu.memory_space<vmem>>) attributes {dimension_semantics = [#tpu.dimension_semantics<parallel>], iteration_bounds = array<i64: 1>, scalar_prefetch = 0 : i64, scratch_operands = 0 : i64, tpu.core_type = #tpu.core_type<tc>, window_params = [{transform_indices = @transform_0, window_bounds = array<i64: 8, 512>}, {pipeline_mode = #tpu.pipeline_mode<synchronous>, transform_indices = @transform_1, window_bounds = array<i64: 512, 128>}, {pipeline_mode = #tpu.pipeline_mode<synchronous>, transform_indices = @transform_2, window_bounds = array<i64: 1, 128>}, {pipeline_mode = #tpu.pipeline_mode<synchronous>, transform_indices = @transform_3, window_bounds = array<i64: 128, 128>}, {pipeline_mode = #tpu.pipeline_mode<synchronous>, transform_indices = @transform_4, window_bounds = array<i64: 1, 128>}, {pipeline_mode = #tpu.pipeline_mode<synchronous>, transform_indices = @transform_5, window_bounds = array<i64: 128, 128>}, {pipeline_mode = #tpu.pipeline_mode<synchronous>, transform_indices = @transform_6, window_bounds = array<i64: 1, 128>}, {transform_indices = @transform_7, window_bounds = array<i64: 8, 128>}]} {
    %c0 = arith.constant 0 : index
    %c0_0 = arith.constant 0 : index
    %0 = vector.load %arg1[%c0, %c0_0] : memref<8x512xf32, #tpu.memory_space<vmem>>, vector<8x512xf32>
    %c0_1 = arith.constant 0 : index
    %c0_2 = arith.constant 0 : index
    %1 = vector.load %arg2[%c0_1, %c0_2] : memref<512x128xf32, #tpu.memory_space<vmem>>, vector<512x128xf32>
    %cst = arith.constant dense<0.000000e+00> : vector<8x128xf32>
    %2 = tpu.matmul %0, %1, %cst {dimension_numbers = #tpu.dot_dimension_numbers<[1], [0], [0], [1], [0, 0, 1, 1], [], []>} : vector<8x512xf32>, vector<512x128xf32>, vector<8x128xf32> -> vector<8x128xf32>
    %c0_3 = arith.constant 0 : index
    %c0_4 = arith.constant 0 : index
    %3 = vector.load %arg3[%c0_3, %c0_4] : memref<1x128xf32, #tpu.memory_space<vmem>>, vector<1x128xf32>
    %4 = vector.broadcast %3 : vector<1x128xf32> to vector<8x128xf32>
    %5 = arith.addf %2, %4 : vector<8x128xf32>
    %cst_5 = arith.constant 0.000000e+00 : f32
    %6 = vector.broadcast %cst_5 : f32 to vector<8x128xf32>
    %7 = arith.maximumf %5, %6 : vector<8x128xf32>
    %c0_6 = arith.constant 0 : index
    %c0_7 = arith.constant 0 : index
    %8 = vector.load %arg4[%c0_6, %c0_7] : memref<128x128xf32, #tpu.memory_space<vmem>>, vector<128x128xf32>
    %cst_8 = arith.constant dense<0.000000e+00> : vector<8x128xf32>
    %9 = tpu.matmul %7, %8, %cst_8 {dimension_numbers = #tpu.dot_dimension_numbers<[1], [0], [0], [1], [0, 0, 1, 1], [], []>} : vector<8x128xf32>, vector<128x128xf32>, vector<8x128xf32> -> vector<8x128xf32>
    %c0_9 = arith.constant 0 : index
    %c0_10 = arith.constant 0 : index
    %10 = vector.load %arg5[%c0_9, %c0_10] : memref<1x128xf32, #tpu.memory_space<vmem>>, vector<1x128xf32>
    %11 = vector.broadcast %10 : vector<1x128xf32> to vector<8x128xf32>
    %12 = arith.addf %9, %11 : vector<8x128xf32>
    %cst_11 = arith.constant 0.000000e+00 : f32
    %13 = vector.broadcast %cst_11 : f32 to vector<8x128xf32>
    %14 = arith.maximumf %12, %13 : vector<8x128xf32>
    %c0_12 = arith.constant 0 : index
    %c0_13 = arith.constant 0 : index
    %15 = vector.load %arg6[%c0_12, %c0_13] : memref<128x128xf32, #tpu.memory_space<vmem>>, vector<128x128xf32>
    %cst_14 = arith.constant dense<0.000000e+00> : vector<8x128xf32>
    %16 = tpu.matmul %14, %15, %cst_14 {dimension_numbers = #tpu.dot_dimension_numbers<[1], [0], [0], [1], [0, 0, 1, 1], [], []>} : vector<8x128xf32>, vector<128x128xf32>, vector<8x128xf32> -> vector<8x128xf32>
    %c0_15 = arith.constant 0 : index
    %c0_16 = arith.constant 0 : index
    %17 = vector.load %arg7[%c0_15, %c0_16] : memref<1x128xf32, #tpu.memory_space<vmem>>, vector<1x128xf32>
    %18 = vector.broadcast %17 : vector<1x128xf32> to vector<8x128xf32>
    %19 = arith.addf %16, %18 : vector<8x128xf32>
    %c0_17 = arith.constant 0 : index
    %c0_18 = arith.constant 0 : index
    %20 = vector.load %arg8[%c0_17, %c0_18] : memref<8x128xf32, #tpu.memory_space<vmem>>, vector<8x128xf32>
    tpu.vector_store %arg8[%c0_17, %c0_18], %19 {strides = array<i32>} : memref<8x128xf32, #tpu.memory_space<vmem>>, vector<8x128xf32>,
    return
  }
  func.func @transform_0(%arg0: i32) -> (i32, i32) {
    %c0_i32 = arith.constant 0 : i32
    %c0_i32_0 = arith.constant 0 : i32
    return %arg0, %c0_i32 : i32, i32
  }
  func.func @transform_1(%arg0: i32) -> (i32, i32) {
    %c0_i32 = arith.constant 0 : i32
    %c0_i32_0 = arith.constant 0 : i32
    %c0_i32_1 = arith.constant 0 : i32
    return %c0_i32, %c0_i32_0 : i32, i32
  }
  func.func @transform_2(%arg0: i32) -> (i32, i32) {
    %c0_i32 = arith.constant 0 : i32
    %c0_i32_0 = arith.constant 0 : i32
    %c0_i32_1 = arith.constant 0 : i32
    return %c0_i32, %c0_i32_0 : i32, i32
  }
  func.func @transform_3(%arg0: i32) -> (i32, i32) {
    %c0_i32 = arith.constant 0 : i32
    %c0_i32_0 = arith.constant 0 : i32
    %c0_i32_1 = arith.constant 0 : i32
    return %c0_i32, %c0_i32_0 : i32, i32
  }
  func.func @transform_4(%arg0: i32) -> (i32, i32) {
    %c0_i32 = arith.constant 0 : i32
    %c0_i32_0 = arith.constant 0 : i32
    %c0_i32_1 = arith.constant 0 : i32
    return %c0_i32, %c0_i32_0 : i32, i32
  }
  func.func @transform_5(%arg0: i32) -> (i32, i32) {
    %c0_i32 = arith.constant 0 : i32
    %c0_i32_0 = arith.constant 0 : i32
    %c0_i32_1 = arith.constant 0 : i32
    return %c0_i32, %c0_i32_0 : i32, i32
  }
  func.func @transform_6(%arg0: i32) -> (i32, i32) {
    %c0_i32 = arith.constant 0 : i32
    %c0_i32_0 = arith.constant 0 : i32
    %c0_i32_1 = arith.constant 0 : i32
    return %c0_i32, %c0_i32_0 : i32, i32
  }
  func.func @transform_7(%arg0: i32) -> (i32, i32) {
    %c0_i32 = arith.constant 0 : i32
    %c0_i32_0 = arith.constant 0 : i32
    return %arg0, %c0_i32 : i32, i32
  }
}

</mosaic_0001>

<bundles_post_ra>
// kernel: net_forward.3
= control target key start
LH: loop header
LB: loop body
LE: loop exit
PB: predicated region body
PF: predicated region fallthrough
CT: control target
= control target key end

     0   :  { %s975_s12 = smov 0   ;;  %s977_s13 = smov 0   ;;  %s1300_s0 = inlined_call_operand.vmem [shape: f32[8,80], index: 0, kind: input, shape index: {}]   ;;  %s1301_s1 = inlined_call_operand.vmem [shape: f32[4,80,512], index: 1, kind: input, shape index: {}]   ;;  %s1302_s2 = inlined_call_operand.vmem [shape: f32[8,1], index: 2, kind: input, shape index: {}]   ;;  %s1303_s3 = inlined_call_operand.vmem [shape: f32[8,512], index: 3, kind: output, shape index: {}]  }
   0x1   :  { %s979_s14 = smov 0   ;;  %s981_s15 = smov 0  }
   0x2   :  { %s983_s16 = smov 0  }
   0x3 LB: > { %s25_s17 = sadd.s32 1, %s948_s15  ;;  %p65_p1 = scmp.ne.s32.totalorder %s940_s13, %s936_s12  ;;  %s952_s16 = sphi %s983_s16, %s13_s16   ;;  %s948_s15 = sphi %s981_s15, %s1307_s15   ;;  %s944_s14 = sphi %s979_s14, %s1306_s14   ;;  %s940_s13 = sphi %s977_s13, %s1305_s13   ;;  %s936_s12 = sphi %s975_s12, %s1304_s12  }
   0x4   : > { %p27_p0 = scmp.ge.s32.totalorder %s25_s17, 2  ;;  %p66_p2 = scmp.eq.s32.totalorder %s952_s16, 0 }
   0x5   : > { %s58_s19 = sadd.s32 1, %s940_s13  ;;  %p793_p5 = scmp.ge.s32.totalorder %s952_s16, 2 }
   0x6   : > { %s1309_s17 = smov (%p27_p0, %s25_s17), 0  ;;  %p67_p3 = por %p66_p2, %p65_p1 }
   0x7   : > { %s55_s18 = ssub.s32 %s948_s15, %s1309_s17  ;;  %159 = sbr.rel (%p793_p5) target bundleno = 96 (0x60), region = 24 }
   0x8   : > { %p56_p4 = scmp.eq.s32.totalorder %s55_s18, 0 }
   0xa   : > { %s1010_s20 = scalar_select %p56_p4, %s940_s13, %s58_s19  }
   0xc   : > { %162 = sbr.rel (!%p67_p3) target bundleno = 96 (0x60), region = 28  ;;  %s164_s21 = sand.u32 (%p67_p3), 1, %s940_s13  }
   0xd   : > { %s869_s22 = sshll.u32 (%p67_p3), %s948_s15, 4  ;;  %s870_s23 = smul.u32 (%p67_p3), 640, %s164_s21 }
   0xe   : > { %s1018_s26 = scalar_lea.vmem (%p67_p3), %s1301_s1, %s869_s22 }
   0xf   : > { %v182_v0 = vld [vmem:[%s1018_s26] sm:$0xff] (%p67_p3)  ;;  %v184_v1 = vld [vmem:[%s1018_s26 + $0x8] sm:$0xff] (%p67_p3)  ;;  %s1023_s27 = scalar_lea.vmem (%p67_p3), [#allocation2], %s870_s23 }
  0x10   : > { %v186_v2 = vld [vmem:[%s1018_s26 + $0x20] sm:$0xff] (%p67_p3)  ;;  %183 = vst [vmem:[%s1023_s27] sm:$0xff] (%p67_p3), %v182_v0  ;;  %v188_v3 = vld [vmem:[%s1018_s26 + $0x28] sm:$0xff] (%p67_p3) }
  0x11   : > { %185 = vst [vmem:[%s1023_s27 + $0x8] sm:$0xff] %v184_v1  ;;  %v190_v4 = vld [vmem:[%s1018_s26 + $0x40] sm:$0xff]  ;;  %v192_v5 = vld [vmem:[%s1018_s26 + $0x48] sm:$0xff] }
  0x12   : > { %187 = vst [vmem:[%s1023_s27 + $0x10] sm:$0xff] %v186_v2  ;;  %v194_v6 = vld [vmem:[%s1018_s26 + $0x60] sm:$0xff]  ;;  %v196_v7 = vld [vmem:[%s1018_s26 + $0x68] sm:$0xff] }
  0x13   : > { %189 = vst [vmem:[%s1023_s27 + $0x18] sm:$0xff] %v188_v3  ;;  %v198_v8 = vld [vmem:[%s1018_s26 + $0x80] sm:$0xff]  ;;  %v200_v9 = vld [vmem:[%s1018_s26 + $0x88] sm:$0xff] }
  0x14   : > { %191 = vst [vmem:[%s1023_s27 + $0x20] sm:$0xff] %v190_v4  ;;  %v202_v10 = vld [vmem:[%s1018_s26 + $0xa0] sm:$0xff]  ;;  %v204_v11 = vld [vmem:[%s1018_s26 + $0xa8] sm:$0xff] }
  0x15   : > { %193 = vst [vmem:[%s1023_s27 + $0x28] sm:$0xff] %v192_v5  ;;  %v206_v12 = vld [vmem:[%s1018_s26 + $0xc0] sm:$0xff]  ;;  %v208_v13 = vld [vmem:[%s1018_s26 + $0xc8] sm:$0xff] }
  0x16   : > { %195 = vst [vmem:[%s1023_s27 + $0x30] sm:$0xff] %v194_v6  ;;  %v210_v14 = vld [vmem:[%s1018_s26 + $0xe0] sm:$0xff]  ;;  %v212_v15 = vld [vmem:[%s1018_s26 + $0xe8] sm:$0xff] }
  0x17   : > { %197 = vst [vmem:[%s1023_s27 + $0x38] sm:$0xff] %v196_v7  ;;  %v214_v16 = vld [vmem:[%s1018_s26 + $0x100] sm:$0xff]  ;;  %v216_v17 = vld [vmem:[%s1018_s26 + $0x108] sm:$0xff] }
  0x18   : > { %199 = vst [vmem:[%s1023_s27 + $0x40] sm:$0xff] %v198_v8  ;;  %v218_v18 = vld [vmem:[%s1018_s26 + $0x120] sm:$0xff]  ;;  %v220_v19 = vld [vmem:[%s1018_s26 + $0x128] sm:$0xff] }
  0x19   : > { %201 = vst [vmem:[%s1023_s27 + $0x48] sm:$0xff] %v200_v9  ;;  %v222_v20 = vld [vmem:[%s1018_s26 + $0x140] sm:$0xff]  ;;  %v224_v21 = vld [vmem:[%s1018_s26 + $0x148] sm:$0xff] }
  0x1a   : > { %203 = vst [vmem:[%s1023_s27 + $0x50] sm:$0xff] %v202_v10  ;;  %v226_v22 = vld [vmem:[%s1018_s26 + $0x160] sm:$0xff]  ;;  %v228_v23 = vld [vmem:[%s1018_s26 + $0x168] sm:$0xff] }
  0x1b   : > { %205 = vst [vmem:[%s1023_s27 + $0x58] sm:$0xff] %v204_v11  ;;  %v230_v24 = vld [vmem:[%s1018_s26 + $0x180] sm:$0xff]  ;;  %v232_v25 = vld [vmem:[%s1018_s26 + $0x188] sm:$0xff] }
  0x1c   : > { %207 = vst [vmem:[%s1023_s27 + $0x60] sm:$0xff] %v206_v12  ;;  %v234_v26 = vld [vmem:[%s1018_s26 + $0x1a0] sm:$0xff]  ;;  %v236_v27 = vld [vmem:[%s1018_s26 + $0x1a8] sm:$0xff] }
  0x1d   : > { %209 = vst [vmem:[%s1023_s27 + $0x68] sm:$0xff] %v208_v13  ;;  %v238_v28 = vld [vmem:[%s1018_s26 + $0x1c0] sm:$0xff]  ;;  %v240_v29 = vld [vmem:[%s1018_s26 + $0x1c8] sm:$0xff] }
  0x1e   : > { %211 = vst [vmem:[%s1023_s27 + $0x70] sm:$0xff] %v210_v14  ;;  %v242_v30 = vld [vmem:[%s1018_s26 + $0x1e0] sm:$0xff]  ;;  %v244_v31 = vld [vmem:[%s1018_s26 + $0x1e8] sm:$0xff] }
  0x1f   : > { %213 = vst [vmem:[%s1023_s27 + $0x78] sm:$0xff] %v212_v15  ;;  %v246_v32 = vld [vmem:[%s1018_s26 + $0x200] sm:$0xff]  ;;  %v248_v33 = vld [vmem:[%s1018_s26 + $0x208] sm:$0xff] }
  0x20   : > { %215 = vst [vmem:[%s1023_s27 + $0x80] sm:$0xff] %v214_v16  ;;  %v250_v34 = vld [vmem:[%s1018_s26 + $0x220] sm:$0xff]  ;;  %v252_v35 = vld [vmem:[%s1018_s26 + $0x228] sm:$0xff] }
  0x21   : > { %217 = vst [vmem:[%s1023_s27 + $0x88] sm:$0xff] %v216_v17  ;;  %v254_v36 = vld [vmem:[%s1018_s26 + $0x240] sm:$0xff]  ;;  %v256_v37 = vld [vmem:[%s1018_s26 + $0x248] sm:$0xff] }
  0x22   : > { %219 = vst [vmem:[%s1023_s27 + $0x90] sm:$0xff] %v218_v18  ;;  %v258_v38 = vld [vmem:[%s1018_s26 + $0x260] sm:$0xff]  ;;  %v260_v39 = vld [vmem:[%s1018_s26 + $0x268] sm:$0xff] }
  0x23   : > { %221 = vst [vmem:[%s1023_s27 + $0x98] sm:$0xff] %v220_v19  ;;  %v262_v40 = vld [vmem:[%s1018_s26 + $0x280] sm:$0xff]  ;;  %v264_v41 = vld [vmem:[%s1018_s26 + $0x288] sm:$0xff] }
  0x24   : > { %223 = vst [vmem:[%s1023_s27 + $0xa0] sm:$0xff] %v222_v20  ;;  %v266_v42 = vld [vmem:[%s1018_s26 + $0x2a0] sm:$0xff]  ;;  %v268_v43 = vld [vmem:[%s1018_s26 + $0x2a8] sm:$0xff] }
  0x25   : > { %225 = vst [vmem:[%s1023_s27 + $0xa8] sm:$0xff] %v224_v21  ;;  %v270_v44 = vld [vmem:[%s1018_s26 + $0x2c0] sm:$0xff]  ;;  %v272_v45 = vld [vmem:[%s1018_s26 + $0x2c8] sm:$0xff] }
  0x26   : > { %227 = vst [vmem:[%s1023_s27 + $0xb0] sm:$0xff] %v226_v22  ;;  %v274_v46 = vld [vmem:[%s1018_s26 + $0x2e0] sm:$0xff]  ;;  %v276_v47 = vld [vmem:[%s1018_s26 + $0x2e8] sm:$0xff] }
  0x27   : > { %229 = vst [vmem:[%s1023_s27 + $0xb8] sm:$0xff] %v228_v23  ;;  %v278_v48 = vld [vmem:[%s1018_s26 + $0x300] sm:$0xff]  ;;  %v280_v49 = vld [vmem:[%s1018_s26 + $0x308] sm:$0xff] }
  0x28   : > { %231 = vst [vmem:[%s1023_s27 + $0xc0] sm:$0xff] %v230_v24  ;;  %v282_v50 = vld [vmem:[%s1018_s26 + $0x320] sm:$0xff]  ;;  %v284_v51 = vld [vmem:[%s1018_s26 + $0x328] sm:$0xff] }
  0x29   : > { %233 = vst [vmem:[%s1023_s27 + $0xc8] sm:$0xff] %v232_v25  ;;  %v286_v52 = vld [vmem:[%s1018_s26 + $0x340] sm:$0xff]  ;;  %v288_v53 = vld [vmem:[%s1018_s26 + $0x348] sm:$0xff] }
  0x2a   : > { %235 = vst [vmem:[%s1023_s27 + $0xd0] sm:$0xff] %v234_v26  ;;  %v290_v54 = vld [vmem:[%s1018_s26 + $0x360] sm:$0xff]  ;;  %v292_v55 = vld [vmem:[%s1018_s26 + $0x368] sm:$0xff] }
  0x2b   : > { %237 = vst [vmem:[%s1023_s27 + $0xd8] sm:$0xff] %v236_v27  ;;  %v294_v56 = vld [vmem:[%s1018_s26 + $0x380] sm:$0xff]  ;;  %v296_v57 = vld [vmem:[%s1018_s26 + $0x388] sm:$0xff] }
  0x2c   : > { %239 = vst [vmem:[%s1023_s27 + $0xe0] sm:$0xff] %v238_v28  ;;  %v298_v58 = vld [vmem:[%s1018_s26 + $0x3a0] sm:$0xff]  ;;  %v300_v59 = vld [vmem:[%s1018_s26 + $0x3a8] sm:$0xff] }
  0x2d   : > { %241 = vst [vmem:[%s1023_s27 + $0xe8] sm:$0xff] %v240_v29  ;;  %v302_v60 = vld [vmem:[%s1018_s26 + $0x3c0] sm:$0xff]  ;;  %v304_v61 = vld [vmem:[%s1018_s26 + $0x3c8] sm:$0xff] }
  0x2e   : > { %243 = vst [vmem:[%s1023_s27 + $0xf0] sm:$0xff] %v242_v30  ;;  %v306_v62 = vld [vmem:[%s1018_s26 + $0x3e0] sm:$0xff]  ;;  %v308_v63 = vld [vmem:[%s1018_s26 + $0x3e8] sm:$0xff] }
  0x2f   : > { %245 = vst [vmem:[%s1023_s27 + $0xf8] sm:$0xff] %v244_v31  ;;  %v310_v0 = vld [vmem:[%s1018_s26 + $0x400] sm:$0xff]  ;;  %v312_v1 = vld [vmem:[%s1018_s26 + $0x408] sm:$0xff] }
  0x30   : > { %247 = vst [vmem:[%s1023_s27 + $0x100] sm:$0xff] %v246_v32  ;;  %v314_v2 = vld [vmem:[%s1018_s26 + $0x420] sm:$0xff]  ;;  %v316_v3 = vld [vmem:[%s1018_s26 + $0x428] sm:$0xff] }
  0x31   : > { %249 = vst [vmem:[%s1023_s27 + $0x108] sm:$0xff] %v248_v33  ;;  %v318_v4 = vld [vmem:[%s1018_s26 + $0x440] sm:$0xff]  ;;  %v320_v5 = vld [vmem:[%s1018_s26 + $0x448] sm:$0xff] }
  0x32   : > { %251 = vst [vmem:[%s1023_s27 + $0x110] sm:$0xff] %v250_v34  ;;  %v322_v6 = vld [vmem:[%s1018_s26 + $0x460] sm:$0xff]  ;;  %v324_v7 = vld [vmem:[%s1018_s26 + $0x468] sm:$0xff] }
  0x33   : > { %253 = vst [vmem:[%s1023_s27 + $0x118] sm:$0xff] %v252_v35  ;;  %v326_v8 = vld [vmem:[%s1018_s26 + $0x480] sm:$0xff]  ;;  %v328_v9 = vld [vmem:[%s1018_s26 + $0x488] sm:$0xff] }
  0x34   : > { %255 = vst [vmem:[%s1023_s27 + $0x120] sm:$0xff] %v254_v36  ;;  %v330_v10 = vld [vmem:[%s1018_s26 + $0x4a0] sm:$0xff]  ;;  %v332_v11 = vld [vmem:[%s1018_s26 + $0x4a8] sm:$0xff] }
  0x35   : > { %257 = vst [vmem:[%s1023_s27 + $0x128] sm:$0xff] %v256_v37  ;;  %v334_v12 = vld [vmem:[%s1018_s26 + $0x4c0] sm:$0xff]  ;;  %v336_v13 = vld [vmem:[%s1018_s26 + $0x4c8] sm:$0xff] }
  0x36   : > { %259 = vst [vmem:[%s1023_s27 + $0x130] sm:$0xff] %v258_v38  ;;  %v338_v14 = vld [vmem:[%s1018_s26 + $0x4e0] sm:$0xff]  ;;  %v340_v15 = vld [vmem:[%s1018_s26 + $0x4e8] sm:$0xff] }
  0x37   : > { %261 = vst [vmem:[%s1023_s27 + $0x138] sm:$0xff] %v260_v39 }
  0x38   : > { %263 = vst [vmem:[%s1023_s27 + $0x140] sm:$0xff] %v262_v40 }
  0x39   : > { %265 = vst [vmem:[%s1023_s27 + $0x148] sm:$0xff] %v264_v41 }
  0x3a   : > { %267 = vst [vmem:[%s1023_s27 + $0x150] sm:$0xff] %v266_v42 }
  0x3b   : > { %269 = vst [vmem:[%s1023_s27 + $0x158] sm:$0xff] %v268_v43 }
  0x3c   : > { %271 = vst [vmem:[%s1023_s27 + $0x160] sm:$0xff] %v270_v44 }
  0x3d   : > { %273 = vst [vmem:[%s1023_s27 + $0x168] sm:$0xff] %v272_v45 }
  0x3e   : > { %275 = vst [vmem:[%s1023_s27 + $0x170] sm:$0xff] %v274_v46 }
  0x3f   : > { %277 = vst [vmem:[%s1023_s27 + $0x178] sm:$0xff] %v276_v47 }
  0x40   : > { %279 = vst [vmem:[%s1023_s27 + $0x180] sm:$0xff] %v278_v48 }
  0x41   : > { %281 = vst [vmem:[%s1023_s27 + $0x188] sm:$0xff] %v280_v49 }
  0x42   : > { %283 = vst [vmem:[%s1023_s27 + $0x190] sm:$0xff] %v282_v50 }
  0x43   : > { %285 = vst [vmem:[%s1023_s27 + $0x198] sm:$0xff] %v284_v51 }
  0x44   : > { %287 = vst [vmem:[%s1023_s27 + $0x1a0] sm:$0xff] %v286_v52 }
  0x45   : > { %289 = vst [vmem:[%s1023_s27 + $0x1a8] sm:$0xff] %v288_v53 }
  0x46   : > { %291 = vst [vmem:[%s1023_s27 + $0x1b0] sm:$0xff] %v290_v54 }
  0x47   : > { %293 = vst [vmem:[%s1023_s27 + $0x1b8] sm:$0xff] %v292_v55 }
  0x48   : > { %295 = vst [vmem:[%s1023_s27 + $0x1c0] sm:$0xff] %v294_v56 }
  0x49   : > { %297 = vst [vmem:[%s1023_s27 + $0x1c8] sm:$0xff] %v296_v57 }
  0x4a   : > { %299 = vst [vmem:[%s1023_s27 + $0x1d0] sm:$0xff] %v298_v58 }
  0x4b   : > { %301 = vst [vmem:[%s1023_s27 + $0x1d8] sm:$0xff] %v300_v59 }
  0x4c   : > { %303 = vst [vmem:[%s1023_s27 + $0x1e0] sm:$0xff] %v302_v60 }
  0x4d   : > { %305 = vst [vmem:[%s1023_s27 + $0x1e8] sm:$0xff] %v304_v61 }
  0x4e   : > { %307 = vst [vmem:[%s1023_s27 + $0x1f0] sm:$0xff] %v306_v62 }
  0x4f   : > { %309 = vst [vmem:[%s1023_s27 + $0x1f8] sm:$0xff] %v308_v63 }
  0x50   : > { %311 = vst [vmem:[%s1023_s27 + $0x200] sm:$0xff] %v310_v0 }
  0x51   : > { %313 = vst [vmem:[%s1023_s27 + $0x208] sm:$0xff] %v312_v1 }
  0x52   : > { %315 = vst [vmem:[%s1023_s27 + $0x210] sm:$0xff] %v314_v2 }
  0x53   : > { %317 = vst [vmem:[%s1023_s27 + $0x218] sm:$0xff] %v316_v3 }
  0x54   : > { %319 = vst [vmem:[%s1023_s27 + $0x220] sm:$0xff] %v318_v4 }
  0x55   : > { %321 = vst [vmem:[%s1023_s27 + $0x228] sm:$0xff] %v320_v5 }
  0x56   : > { %323 = vst [vmem:[%s1023_s27 + $0x230] sm:$0xff] %v322_v6 }
  0x57   : > { %325 = vst [vmem:[%s1023_s27 + $0x238] sm:$0xff] %v324_v7 }
  0x58   : > { %327 = vst [vmem:[%s1023_s27 + $0x240] sm:$0xff] %v326_v8 }
  0x59   : > { %329 = vst [vmem:[%s1023_s27 + $0x248] sm:$0xff] %v328_v9 }
  0x5a   : > { %331 = vst [vmem:[%s1023_s27 + $0x250] sm:$0xff] %v330_v10 }
  0x5b   : > { %333 = vst [vmem:[%s1023_s27 + $0x258] sm:$0xff] %v332_v11 }
  0x5c   : > { %335 = vst [vmem:[%s1023_s27 + $0x260] sm:$0xff] %v334_v12 }
  0x5d   : > { %337 = vst [vmem:[%s1023_s27 + $0x268] sm:$0xff] %v336_v13 }
  0x5e   : > { %339 = vst [vmem:[%s1023_s27 + $0x270] sm:$0xff] %v338_v14 }
  0x5f   : > { %341 = vst [vmem:[%s1023_s27 + $0x278] sm:$0xff] %v340_v15 }
  0x60 PF: > { %p796_p6 = scmp.ge.s32.totalorder %s952_s16, 1  ;;  %p346_p7 = scmp.lt.s32.totalorder %s952_s16, 3 }
  0x62   : > { %p347_p8 = pnand %p796_p6, %p346_p7 }
  0x63   : > { %s353_s28 = sand.u32 (!%p347_p8), 1, %s936_s12   ;;  %s797_s8 = sshll.u32 (!%p347_p8), %s944_s14, 1 }
  0x64   : > { %350 = sbr.rel (%p347_p8) target bundleno = 289 (0x121), region = 51  ;;  %p400_p9 = scmp.lt.s32.totalorder (!%p347_p8), %s797_s8, 3 }
  0x65   : > { %s871_s29 = smul.u32 (!%p347_p8), 640, %s353_s28 }
  0x67   : > { %s1185_s30 = scalar_lea.vmem (!%p347_p8), [#allocation2], %s871_s29 }
  0x69   : > { %v427_v16 = vld [vmem:[%s1185_s30 + $0x90] sm:$0xff]  ;;  %v428_v17 = vld [vmem:[%s1185_s30 + $0x98] sm:$0xff]  ;;  %v425_v20 = vld [vmem:[%s1185_s30 + $0x80] sm:$0xff]  ;;  %vm434_vm0 = vcmask 654336   ;;  %s1311_s8 = smov (!%p400_p9, %s797_s8), 3 }
  0x6a   : > { %v819_v18 = vld [vmem:[%s1185_s30 + $0x130] sm:$0xff]  ;;  %444 = vmatpush.msra.mxu0 %v427_v16  ;;  %464 = vmatpush.msra.mxu1 %v428_v17  ;;  %v820_v19 = vld [vmem:[%s1185_s30 + $0x138] sm:$0xff]  ;;  %v426_v21 = vld [vmem:[%s1185_s30 + $0x88] sm:$0xff]  ;;  %s798_s9 = sshll.u32 %s1311_s8, 3 }
  0x6b   : > { %505 = vmatpush.msra.mxu2 %v819_v18  ;;  %525 = vmatpush.msra.mxu3 %v820_v19  ;;  %v817_v22 = vld [vmem:[%s1185_s30 + $0x120] sm:$0xff]  ;;  %v818_v23 = vld [vmem:[%s1185_s30 + $0x128] sm:$0xff]  ;;  %v423_v24 = vld [vmem:[%s1185_s30 + $0x70] sm:$0xff]  ;;  %s405_s12 = scalar_lea.vmem %s1303_s3, %s798_s9 }
  0x6c   : > { %445 = vmatpush.msra.mxu0 %v425_v20  ;;  %465 = vmatpush.msra.mxu1 %v426_v21  ;;  %v424_v25 = vld [vmem:[%s1185_s30 + $0x78] sm:$0xff]  ;;  %v815_v26 = vld [vmem:[%s1185_s30 + $0x110] sm:$0xff]  ;;  %v421_v28 = vld [vmem:[%s1185_s30 + $0x60] sm:$0xff] }
  0x6d   : > { %v816_v27 = vld [vmem:[%s1185_s30 + $0x118] sm:$0xff]  ;;  %506 = vmatpush.msra.mxu2 %v817_v22  ;;  %526 = vmatpush.msra.mxu3 %v818_v23  ;;  %v422_v29 = vld [vmem:[%s1185_s30 + $0x68] sm:$0xff]  ;;  %v813_v30 = vld [vmem:[%s1185_s30 + $0x100] sm:$0xff] }
  0x6e   : > { %446 = vmatpush.msra.mxu0 %v423_v24  ;;  %466 = vmatpush.msra.mxu1 %v424_v25  ;;  %v814_v31 = vld [vmem:[%s1185_s30 + $0x108] sm:$0xff]  ;;  %v419_v32 = vld [vmem:[%s1185_s30 + $0x50] sm:$0xff]  ;;  %v420_v33 = vld [vmem:[%s1185_s30 + $0x58] sm:$0xff] }
  0x6f   : > { %507 = vmatpush.msra.mxu2 %v815_v26  ;;  %527 = vmatpush.msra.mxu3 %v816_v27  ;;  %v811_v34 = vld [vmem:[%s1185_s30 + $0xf0] sm:$0xff]  ;;  %v812_v35 = vld [vmem:[%s1185_s30 + $0xf8] sm:$0xff]  ;;  %v417_v36 = vld [vmem:[%s1185_s30 + $0x40] sm:$0xff] }
  0x70   : > { %447 = vmatpush.msra.mxu0 %v421_v28  ;;  %467 = vmatpush.msra.mxu1 %v422_v29  ;;  %v418_v37 = vld [vmem:[%s1185_s30 + $0x48] sm:$0xff]  ;;  %v809_v38 = vld [vmem:[%s1185_s30 + $0xe0] sm:$0xff]  ;;  %v415_v40 = vld [vmem:[%s1185_s30 + $0x30] sm:$0xff] }
  0x71   : > { %508 = vmatpush.msra.mxu2 %v813_v30  ;;  %528 = vmatpush.msra.mxu3 %v814_v31  ;;  %v810_v39 = vld [vmem:[%s1185_s30 + $0xe8] sm:$0xff]  ;;  %v416_v41 = vld [vmem:[%s1185_s30 + $0x38] sm:$0xff]  ;;  %v807_v42 = vld [vmem:[%s1185_s30 + $0xd0] sm:$0xff] }
  0x72   : > { %448 = vmatpush.msra.mxu0 %v419_v32  ;;  %468 = vmatpush.msra.mxu1 %v420_v33  ;;  %v808_v43 = vld [vmem:[%s1185_s30 + $0xd8] sm:$0xff]  ;;  %v413_v44 = vld [vmem:[%s1185_s30 + $0x20] sm:$0xff]  ;;  %v414_v45 = vld [vmem:[%s1185_s30 + $0x28] sm:$0xff] }
  0x73   : > { %509 = vmatpush.msra.mxu2 %v811_v34  ;;  %529 = vmatpush.msra.mxu3 %v812_v35  ;;  %v805_v46 = vld [vmem:[%s1185_s30 + $0xc0] sm:$0xff]  ;;  %v806_v47 = vld [vmem:[%s1185_s30 + $0xc8] sm:$0xff]  ;;  %v411_v48 = vld [vmem:[%s1185_s30 + $0x10] sm:$0xff]  ;;  %v954_v34 = vmov 0  }
  0x74   : > { %449 = vmatpush.msra.mxu0 %v417_v36  ;;  %469 = vmatpush.msra.mxu1 %v418_v37  ;;  %v412_v49 = vld [vmem:[%s1185_s30 + $0x18] sm:$0xff]  ;;  %v803_v50 = vld [vmem:[%s1185_s30 + $0xb0] sm:$0xff]  ;;  %v409_v52 = vld [vmem:[%s1185_s30] sm:$0xff] }
  0x75   : > { %510 = vmatpush.msra.mxu2 %v809_v38  ;;  %530 = vmatpush.msra.mxu3 %v810_v39  ;;  %v804_v51 = vld [vmem:[%s1185_s30 + $0xb8] sm:$0xff]  ;;  %v410_v53 = vld [vmem:[%s1185_s30 + $0x8] sm:$0xff]  ;;  %v801_v54 = vld [vmem:[%s1185_s30 + $0xa0] sm:$0xff] }
  0x76   : > { %450 = vmatpush.msra.mxu0 %v415_v40  ;;  %470 = vmatpush.msra.mxu1 %v416_v41  ;;  %v802_v55 = vld [vmem:[%s1185_s30 + $0xa8] sm:$0xff]  ;;  %v841_v56 = vld [vmem:[%s1185_s30 + $0x1d0] sm:$0xff]  ;;  %v842_v57 = vld [vmem:[%s1185_s30 + $0x1d8] sm:$0xff] }
  0x77   : > { %511 = vmatpush.msra.mxu2 %v807_v42  ;;  %531 = vmatpush.msra.mxu3 %v808_v43  ;;  %v863_v58 = vld [vmem:[%s1185_s30 + $0x270] sm:$0xff]  ;;  %v864_v59 = vld [vmem:[%s1185_s30 + $0x278] sm:$0xff]  ;;  %v839_v60 = vld [vmem:[%s1185_s30 + $0x1c0] sm:$0xff] }
  0x78   : > { %451 = vmatpush.msra.mxu0 %v413_v44  ;;  %471 = vmatpush.msra.mxu1 %v414_v45  ;;  %v840_v61 = vld [vmem:[%s1185_s30 + $0x1c8] sm:$0xff]  ;;  %v861_v62 = vld [vmem:[%s1185_s30 + $0x260] sm:$0xff]  ;;  %v837_v0 = vld [vmem:[%s1185_s30 + $0x1b0] sm:$0xff] }
  0x79   : > { %512 = vmatpush.msra.mxu2 %v805_v46  ;;  %532 = vmatpush.msra.mxu3 %v806_v47  ;;  %v862_v63 = vld [vmem:[%s1185_s30 + $0x268] sm:$0xff]  ;;  %v838_v1 = vld [vmem:[%s1185_s30 + $0x1b8] sm:$0xff]  ;;  %v859_v2 = vld [vmem:[%s1185_s30 + $0x250] sm:$0xff] }
  0x7a   : > { %452 = vmatpush.msra.mxu0 %v411_v48  ;;  %472 = vmatpush.msra.mxu1 %v412_v49  ;;  %v860_v3 = vld [vmem:[%s1185_s30 + $0x258] sm:$0xff]  ;;  %v835_v4 = vld [vmem:[%s1185_s30 + $0x1a0] sm:$0xff]  ;;  %v836_v5 = vld [vmem:[%s1185_s30 + $0x1a8] sm:$0xff] }
  0x7b   : > { %513 = vmatpush.msra.mxu2 %v803_v50  ;;  %533 = vmatpush.msra.mxu3 %v804_v51  ;;  %v857_v6 = vld [vmem:[%s1185_s30 + $0x240] sm:$0xff]  ;;  %v858_v7 = vld [vmem:[%s1185_s30 + $0x248] sm:$0xff]  ;;  %v833_v8 = vld [vmem:[%s1185_s30 + $0x190] sm:$0xff] }
  0x7c   : > { %453 = vmatpush.msra.mxu0 %v409_v52  ;;  %473 = vmatpush.msra.mxu1 %v410_v53  ;;  %v834_v9 = vld [vmem:[%s1185_s30 + $0x198] sm:$0xff]  ;;  %v855_v10 = vld [vmem:[%s1185_s30 + $0x230] sm:$0xff]  ;;  %v407_v12 = vld [vmem:[%s1300_s0] sm:$0xff] }
  0x7d   : > { %514 = vmatpush.msra.mxu2 %v801_v54  ;;  %534 = vmatpush.msra.mxu3 %v802_v55  ;;  %v856_v11 = vld [vmem:[%s1185_s30 + $0x238] sm:$0xff]  ;;  %v831_v13 = vld [vmem:[%s1185_s30 + $0x180] sm:$0xff]  ;;  %v832_v14 = vld [vmem:[%s1185_s30 + $0x188] sm:$0xff] }
  0x7e   : > { %568 = vmatpush.msrb.mxu0 %v841_v56  ;;  %588 = vmatpush.msrb.mxu1 %v842_v57  ;;  %v853_v15 = vld [vmem:[%s1185_s30 + $0x220] sm:$0xff]  ;;  %v854_v16 = vld [vmem:[%s1185_s30 + $0x228] sm:$0xff]  ;;  %v829_v17 = vld [vmem:[%s1185_s30 + $0x170] sm:$0xff] }
  0x7f   : > { %631 = vmatpush.msrb.mxu2 %v863_v58  ;;  %651 = vmatpush.msrb.mxu3 %v864_v59  ;;  %v830_v18 = vld [vmem:[%s1185_s30 + $0x178] sm:$0xff]  ;;  %v851_v19 = vld [vmem:[%s1185_s30 + $0x210] sm:$0xff]  ;;  %v827_v21 = vld [vmem:[%s1185_s30 + $0x160] sm:$0xff] }
  0x80   : > { %569 = vmatpush.msrb.mxu0 %v839_v60  ;;  %589 = vmatpush.msrb.mxu1 %v840_v61  ;;  %v852_v20 = vld [vmem:[%s1185_s30 + $0x218] sm:$0xff]  ;;  %v828_v22 = vld [vmem:[%s1185_s30 + $0x168] sm:$0xff]  ;;  %v849_v23 = vld [vmem:[%s1185_s30 + $0x200] sm:$0xff] }
  0x81   : > { %632 = vmatpush.msrb.mxu2 %v861_v62  ;;  %652 = vmatpush.msrb.mxu3 %v862_v63  ;;  %v850_v24 = vld [vmem:[%s1185_s30 + $0x208] sm:$0xff]  ;;  %v825_v25 = vld [vmem:[%s1185_s30 + $0x150] sm:$0xff]  ;;  %v826_v26 = vld [vmem:[%s1185_s30 + $0x158] sm:$0xff] }
  0x82   : > { %570 = vmatpush.msrb.mxu0 %v837_v0  ;;  %590 = vmatpush.msrb.mxu1 %v838_v1  ;;  %v847_v27 = vld [vmem:[%s1185_s30 + $0x1f0] sm:$0xff]  ;;  %v848_v28 = vld [vmem:[%s1185_s30 + $0x1f8] sm:$0xff]  ;;  %v823_v29 = vld [vmem:[%s1185_s30 + $0x140] sm:$0xff] }
  0x83   : > { %633 = vmatpush.msrb.mxu2 %v859_v2  ;;  %653 = vmatpush.msrb.mxu3 %v860_v3  ;;  %v824_v30 = vld [vmem:[%s1185_s30 + $0x148] sm:$0xff]  ;;  %v845_v31 = vld [vmem:[%s1185_s30 + $0x1e0] sm:$0xff] }
  0x84   : > { %571 = vmatpush.msrb.mxu0 %v835_v4  ;;  %591 = vmatpush.msrb.mxu1 %v836_v5  ;;  %v846_v32 = vld [vmem:[%s1185_s30 + $0x1e8] sm:$0xff]  ;;  %v408_v33 = vld [vmem:[%s1302_s2] sm:$0xff] }
  0x85   : > { %634 = vmatpush.msrb.mxu2 %v857_v6  ;;  %654 = vmatpush.msrb.mxu3 %v858_v7 }
  0x86   : > { %572 = vmatpush.msrb.mxu0 %v833_v8  ;;  %592 = vmatpush.msrb.mxu1 %v834_v9 }
  0x87   : > { %635 = vmatpush.msrb.mxu2 %v855_v10  ;;  %655 = vmatpush.msrb.mxu3 %v856_v11 }
  0x88   : > { %821 = vmatmul.msk.f32.vlgmr.msra.gmra.mxu2 %vm434_vm0, %v407_v12  ;;  %822 = vmatmul.msk.f32.vlgmr.msra.gmra.mxu3 %vm434_vm0, %v407_v12 }
  0x89   : > { %573 = vmatpush.msrb.mxu0 %v831_v13  ;;  %593 = vmatpush.msrb.mxu1 %v832_v14 }
  0x8a   : > { %636 = vmatpush.msrb.mxu2 %v853_v15  ;;  %656 = vmatpush.msrb.mxu3 %v854_v16 }
  0x8b   : > { %799 = vmatmul.msk.f32.vlgmr.msra.gmra.mxu0 %vm434_vm0, %v407_v12  ;;  %800 = vmatmul.msk.f32.vlgmr.msra.gmra.mxu1 %vm434_vm0, %v407_v12 }
  0x8c   : > { %574 = vmatpush.msrb.mxu0 %v829_v17  ;;  %594 = vmatpush.msrb.mxu1 %v830_v18 }
  0x8d   : > { %637 = vmatpush.msrb.mxu2 %v851_v19  ;;  %657 = vmatpush.msrb.mxu3 %v852_v20 }
  0x8e   : > { %575 = vmatpush.msrb.mxu0 %v827_v21  ;;  %595 = vmatpush.msrb.mxu1 %v828_v22 }
  0x8f   : > { %638 = vmatpush.msrb.mxu2 %v849_v23  ;;  %658 = vmatpush.msrb.mxu3 %v850_v24 }
  0x90   : > { %576 = vmatpush.msrb.mxu0 %v825_v25  ;;  %596 = vmatpush.msrb.mxu1 %v826_v26 }
  0x91   : > { %639 = vmatpush.msrb.mxu2 %v847_v27  ;;  %659 = vmatpush.msrb.mxu3 %v848_v28 }
  0x92   : > { %577 = vmatpush.msrb.mxu0 %v823_v29  ;;  %597 = vmatpush.msrb.mxu1 %v824_v30 }
  0x93   : > { %640 = vmatpush.msrb.mxu2 %v845_v31  ;;  %660 = vmatpush.msrb.mxu3 %v846_v32 }
  0x94   : > { %843 = vmatmul.msk.f32.vlgmr.msrb.gmra.mxu0 %vm434_vm0, %v407_v12  ;;  %844 = vmatmul.msk.f32.vlgmr.msrb.gmra.mxu1 %vm434_vm0, %v407_v12 }
  0x95   : > { %865 = vmatmul.msk.f32.vlgmr.msrb.gmra.mxu2 %vm434_vm0, %v407_v12  ;;  %866 = vmatmul.msk.f32.vlgmr.msrb.gmra.mxu3 %vm434_vm0, %v407_v12 }
  0x96   : > { %913 = vset.pattern.permute.xlu0 %v954_v34 }
  0x97   : > { %431 = vperm.xlu0 %913, %v408_v33  }
 0x108   : > { %v455_v35 = vpop.f32.mrf.mxu0  ;;  %v475_v36 = vpop.f32.mrf.mxu1 }
 0x109   : > { %v432_v37 = vpop.permute.xlu0 %431 }
 0x10a   : > { %v476_v40 = vadd.f32 %v475_v36, %v432_v37  ;;  %v456_v44 = vadd.f32 %v455_v35, %v432_v37 }
 0x10b   : > { %v536_v38 = vpop.f32.mrf.mxu3  ;;  %v516_v39 = vpop.f32.mrf.mxu2 }
 0x10c   : > { %v537_v41 = vadd.f32 %v536_v38, %v432_v37  ;;  %v517_v45 = vadd.f32 %v516_v39, %v432_v37 }
 0x10e   : > { %v540_v46 = vmax.f32 %v476_v40, %v537_v41  ;;  %v539_v49 = vmax.f32 %v456_v44, %v517_v45 }
 0x111   : > { %v579_v42 = vpop.f32.mrf.mxu0  ;;  %v599_v43 = vpop.f32.mrf.mxu1 }
 0x112   : > { %v580_v47 = vadd.f32 %v579_v42, %v432_v37  ;;  %v600_v48 = vadd.f32 %v599_v43, %v432_v37 }
 0x114   : > { %v602_v52 = vmax.f32 %v539_v49, %v580_v47  ;;  %v603_v53 = vmax.f32 %v540_v46, %v600_v48 }
 0x118   : > { %v642_v50 = vpop.f32.mrf.mxu2  ;;  %v662_v51 = vpop.f32.mrf.mxu3 }
 0x119   : > { %v643_v54 = vadd.f32 %v642_v50, %v432_v37  ;;  %v663_v55 = vadd.f32 %v662_v51, %v432_v37 }
 0x11b   : > { %v665_v56 = vmax.f32 %v602_v52, %v643_v54  ;;  %v666_v57 = vmax.f32 %v603_v53, %v663_v55 }
 0x11d   : > { %v667_v58 = vmax.f32 %v665_v56, 0.0  ;;  %v668_v59 = vmax.f32 %v666_v57, 0.0 }
 0x11f   : > { %669 = vst [vmem:[%s405_s12] sm:$0xff] %v667_v58 }
 0x120   : > { %670 = vst [vmem:[%s405_s12 + $0x8] sm:$0xff] %v668_v59 }
 0x121 PF: > { %s13_s16 = sadd.s32 1, %s952_s16   ;;  %s1304_s12 = smov %s940_s13 }
 0x122   : > { %p10_p10 = scmp.ge.s32.totalorder %s13_s16, 4   ;;  %s1305_s13 = smov %s1010_s20 }
 0x123   : > { %s1306_s14 = smov %s948_s15  ;;  %s1307_s15 = smov %s1309_s17 }
 0x124   :  { %12 = sbr.rel (!%p10_p10) target bundleno = 3 (0x3), region = 99 }

// kernel: net_forward.4
= control target key start
LH: loop header
LB: loop body
LE: loop exit
PB: predicated region body
PF: predicated region fallthrough
CT: control target
= control target key end

     0   :  { %s723_s12 = smov 0   ;;  %s725_s13 = smov 0   ;;  %s1005_s0 = inlined_call_operand.vmem [shape: f32[16,152], index: 0, kind: input, shape index: {}]   ;;  %s1006_s1 = inlined_call_operand.vmem [shape: f32[4,152,128], index: 1, kind: input, shape index: {}]   ;;  %s1007_s2 = inlined_call_operand.vmem [shape: f32[16,1], index: 2, kind: input, shape index: {}]   ;;  %s1008_s3 = inlined_call_operand.vmem [shape: f32[16,128], index: 3, kind: output, shape index: {}]  }
   0x1   :  { %s727_s14 = smov 0  }
   0x2 LB: > { %s22_s15 = sadd.s32 1, %s696_s13  ;;  %p583_p0 = scmp.ge.s32.totalorder %s700_s14, 1  ;;  %s700_s14 = sphi %s727_s14, %s13_s14   ;;  %s696_s13 = sphi %s725_s13, %s1010_s13   ;;  %s692_s12 = sphi %s723_s12, %s1009_s12  }
   0x3   : > { %p23_p1 = scmp.ge.s32.totalorder %s22_s15, 2  ;;  %p169_p2 = scmp.lt.s32.totalorder %s700_s14, 3 }
   0x5   : > { %s1012_s15 = smov (%p23_p1, %s22_s15), 0  ;;  %p170_p3 = pnand %p583_p0, %p169_p2 }
   0x6   : > { %p203_p4 = scmp.lt.s32.totalorder (!%p170_p3), %s692_s12, 1 }
   0x7   : > { %173 = sbr.rel (%p170_p3) target bundleno = 196 (0xc4), region = 32 }
   0xc   : > { %v604_v0 = vld [vmem:[%s1006_s1 + $0x110] sm:$0xff]  ;;  %v627_v2 = vld [vmem:[%s1006_s1 + $0x1c0] sm:$0xff]  ;;  %v603_v3 = vld [vmem:[%s1006_s1 + $0x108] sm:$0xff]  ;;  %s1014_s12 = smov (!%p203_p4, %s692_s12), 1  ;;  %vm250_vm0 = vcmask 195584  }
   0xd   : > { %v244_v1 = vld [vmem:[%s1006_s1 + $0x90] sm:$0xff]  ;;  %314 = vmatpush.msra.mxu2 %v604_v0  ;;  %v243_v4 = vld [vmem:[%s1006_s1 + $0x88] sm:$0xff]  ;;  %v626_v5 = vld [vmem:[%s1006_s1 + $0x1b8] sm:$0xff]  ;;  %408 = vmatpush.msra.mxu3 %v627_v2  ;;  %s651_s18 = sshll.u32 %s1014_s12, 4  ;;  %s586_s22 = sshll.u32 %s1014_s12, 3 }
   0xe   : > { %287 = vmatpush.msra.mxu1 %v244_v1  ;;  %v241_v6 = vld [vmem:[%s1006_s1 + $0x78] sm:$0xff]  ;;  %v602_v7 = vld [vmem:[%s1006_s1 + $0x100] sm:$0xff]  ;;  %v625_v9 = vld [vmem:[%s1006_s1 + $0x1b0] sm:$0xff]  ;;  %s207_s6 = scalar_lea.vmem %s1005_s0, %s651_s18  ;;  %s215_s4 = scalar_lea.vmem %s1007_s2, %s586_s22 }
   0xf   : > { %v242_v8 = vld [vmem:[%s1006_s1 + $0x80] sm:$0xff]  ;;  %315 = vmatpush.msra.mxu2 %v603_v3  ;;  %v240_v10 = vld [vmem:[%s1006_s1 + $0x70] sm:$0xff]  ;;  %409 = vmatpush.msra.mxu3 %v626_v5  ;;  %v601_v11 = vld [vmem:[%s1006_s1 + $0xf8] sm:$0xff]  ;;  %s222_s17 = scalar_lea.vmem %s1008_s3, %s586_s22 }
  0x10   : > { %288 = vmatpush.msra.mxu1 %v243_v4  ;;  %254 = vmatpush.msra.mxu0 %v241_v6  ;;  %v624_v12 = vld [vmem:[%s1006_s1 + $0x1a8] sm:$0xff]  ;;  %v644_v13 = vld [vmem:[%s1006_s1 + $0x240] sm:$0xff]  ;;  %v600_v15 = vld [vmem:[%s1006_s1 + $0xf0] sm:$0xff] }
  0x11   : > { %316 = vmatpush.msra.mxu2 %v602_v7  ;;  %v239_v14 = vld [vmem:[%s1006_s1 + $0x68] sm:$0xff]  ;;  %410 = vmatpush.msra.mxu3 %v625_v9  ;;  %v623_v16 = vld [vmem:[%s1006_s1 + $0x1a0] sm:$0xff]  ;;  %v643_v17 = vld [vmem:[%s1006_s1 + $0x238] sm:$0xff] }
  0x12   : > { %289 = vmatpush.msra.mxu1 %v242_v8  ;;  %255 = vmatpush.msra.mxu0 %v240_v10  ;;  %v238_v18 = vld [vmem:[%s1006_s1 + $0x60] sm:$0xff]  ;;  %v599_v19 = vld [vmem:[%s1006_s1 + $0xe8] sm:$0xff]  ;;  %v622_v20 = vld [vmem:[%s1006_s1 + $0x198] sm:$0xff] }
  0x13   : > { %317 = vmatpush.msra.mxu2 %v601_v11  ;;  %436 = vmatpush.msrb.mxu3 %v644_v13  ;;  %v642_v21 = vld [vmem:[%s1006_s1 + $0x230] sm:$0xff]  ;;  %v237_v22 = vld [vmem:[%s1006_s1 + $0x58] sm:$0xff]  ;;  %v598_v23 = vld [vmem:[%s1006_s1 + $0xe0] sm:$0xff] }
  0x14   : > { %375 = vmatpush.msrb.mxu1 %v624_v12  ;;  %256 = vmatpush.msra.mxu0 %v239_v14  ;;  %v621_v24 = vld [vmem:[%s1006_s1 + $0x190] sm:$0xff]  ;;  %v641_v25 = vld [vmem:[%s1006_s1 + $0x228] sm:$0xff]  ;;  %v597_v27 = vld [vmem:[%s1006_s1 + $0xd8] sm:$0xff] }
  0x15   : > { %318 = vmatpush.msra.mxu2 %v600_v15  ;;  %437 = vmatpush.msrb.mxu3 %v643_v17  ;;  %v236_v26 = vld [vmem:[%s1006_s1 + $0x50] sm:$0xff]  ;;  %v620_v28 = vld [vmem:[%s1006_s1 + $0x188] sm:$0xff]  ;;  %v640_v29 = vld [vmem:[%s1006_s1 + $0x220] sm:$0xff]  ;;  %v702_v15 = vmov 0  }
  0x16   : > { %376 = vmatpush.msrb.mxu1 %v623_v16  ;;  %257 = vmatpush.msra.mxu0 %v238_v18  ;;  %v235_v30 = vld [vmem:[%s1006_s1 + $0x48] sm:$0xff]  ;;  %v596_v31 = vld [vmem:[%s1006_s1 + $0xd0] sm:$0xff]  ;;  %v619_v32 = vld [vmem:[%s1006_s1 + $0x180] sm:$0xff] }
  0x17   : > { %319 = vmatpush.msra.mxu2 %v599_v19  ;;  %438 = vmatpush.msrb.mxu3 %v642_v21  ;;  %v639_v33 = vld [vmem:[%s1006_s1 + $0x218] sm:$0xff]  ;;  %v234_v34 = vld [vmem:[%s1006_s1 + $0x40] sm:$0xff]  ;;  %v595_v35 = vld [vmem:[%s1006_s1 + $0xc8] sm:$0xff] }
  0x18   : > { %377 = vmatpush.msrb.mxu1 %v622_v20  ;;  %258 = vmatpush.msra.mxu0 %v237_v22  ;;  %v618_v36 = vld [vmem:[%s1006_s1 + $0x178] sm:$0xff]  ;;  %v638_v37 = vld [vmem:[%s1006_s1 + $0x210] sm:$0xff]  ;;  %v594_v39 = vld [vmem:[%s1006_s1 + $0xc0] sm:$0xff] }
  0x19   : > { %320 = vmatpush.msra.mxu2 %v598_v23  ;;  %439 = vmatpush.msrb.mxu3 %v641_v25  ;;  %v233_v38 = vld [vmem:[%s1006_s1 + $0x38] sm:$0xff]  ;;  %v617_v40 = vld [vmem:[%s1006_s1 + $0x170] sm:$0xff]  ;;  %v637_v41 = vld [vmem:[%s1006_s1 + $0x208] sm:$0xff] }
  0x1a   : > { %378 = vmatpush.msrb.mxu1 %v621_v24  ;;  %259 = vmatpush.msra.mxu0 %v236_v26  ;;  %v232_v42 = vld [vmem:[%s1006_s1 + $0x30] sm:$0xff]  ;;  %v593_v43 = vld [vmem:[%s1006_s1 + $0xb8] sm:$0xff]  ;;  %v616_v44 = vld [vmem:[%s1006_s1 + $0x168] sm:$0xff] }
  0x1b   : > { %321 = vmatpush.msra.mxu2 %v597_v27  ;;  %440 = vmatpush.msrb.mxu3 %v640_v29  ;;  %v636_v45 = vld [vmem:[%s1006_s1 + $0x200] sm:$0xff]  ;;  %v231_v46 = vld [vmem:[%s1006_s1 + $0x28] sm:$0xff]  ;;  %v592_v47 = vld [vmem:[%s1006_s1 + $0xb0] sm:$0xff] }
  0x1c   : > { %379 = vmatpush.msrb.mxu1 %v620_v28  ;;  %260 = vmatpush.msra.mxu0 %v235_v30  ;;  %v615_v48 = vld [vmem:[%s1006_s1 + $0x160] sm:$0xff]  ;;  %v635_v49 = vld [vmem:[%s1006_s1 + $0x1f8] sm:$0xff]  ;;  %v591_v51 = vld [vmem:[%s1006_s1 + $0xa8] sm:$0xff] }
  0x1d   : > { %322 = vmatpush.msra.mxu2 %v596_v31  ;;  %441 = vmatpush.msrb.mxu3 %v639_v33  ;;  %v230_v50 = vld [vmem:[%s1006_s1 + $0x20] sm:$0xff]  ;;  %v614_v52 = vld [vmem:[%s1006_s1 + $0x158] sm:$0xff]  ;;  %v634_v53 = vld [vmem:[%s1006_s1 + $0x1f0] sm:$0xff] }
  0x1e   : > { %380 = vmatpush.msrb.mxu1 %v619_v32  ;;  %261 = vmatpush.msra.mxu0 %v234_v34  ;;  %v229_v54 = vld [vmem:[%s1006_s1 + $0x18] sm:$0xff]  ;;  %v590_v55 = vld [vmem:[%s1006_s1 + $0xa0] sm:$0xff]  ;;  %v613_v56 = vld [vmem:[%s1006_s1 + $0x150] sm:$0xff] }
  0x1f   : > { %323 = vmatpush.msra.mxu2 %v595_v35  ;;  %442 = vmatpush.msrb.mxu3 %v638_v37  ;;  %v633_v57 = vld [vmem:[%s1006_s1 + $0x1e8] sm:$0xff]  ;;  %v228_v59 = vld [vmem:[%s1006_s1 + $0x10] sm:$0xff]  ;;  %v589_v60 = vld [vmem:[%s1006_s1 + $0x98] sm:$0xff] }
  0x20   : > { %381 = vmatpush.msrb.mxu1 %v618_v36  ;;  %262 = vmatpush.msra.mxu0 %v233_v38  ;;  %v224_v58 = vld [vmem:[%s207_s6 + $0x8] sm:$0xff]  ;;  %v632_v62 = vld [vmem:[%s1006_s1 + $0x1e0] sm:$0xff]  ;;  %v631_v3 = vld [vmem:[%s1006_s1 + $0x1d8] sm:$0xff] }
  0x21   : > { %324 = vmatpush.msra.mxu2 %v594_v39  ;;  %443 = vmatpush.msrb.mxu3 %v637_v41  ;;  %v612_v61 = vld [vmem:[%s1006_s1 + $0x148] sm:$0xff]  ;;  %v223_v63 = vld [vmem:[%s207_s6] sm:$0xff]  ;;  %v610_v6 = vld [vmem:[%s1006_s1 + $0x138] sm:$0xff] }
  0x22   : > { %382 = vmatpush.msrb.mxu1 %v617_v40  ;;  %263 = vmatpush.msra.mxu0 %v232_v42  ;;  %v607_v0 = vld [vmem:[%s1006_s1 + $0x128] sm:$0xff]  ;;  %v611_v2 = vld [vmem:[%s1006_s1 + $0x140] sm:$0xff]  ;;  %v630_v7 = vld [vmem:[%s1006_s1 + $0x1d0] sm:$0xff] }
  0x23   : > { %325 = vmatpush.msra.mxu2 %v593_v43  ;;  %444 = vmatpush.msrb.mxu3 %v636_v45  ;;  %v227_v1 = vld [vmem:[%s1006_s1 + $0x8] sm:$0xff]  ;;  %v226_v4 = vld [vmem:[%s1006_s1] sm:$0xff]  ;;  %v605_v8 = vld [vmem:[%s1006_s1 + $0x118] sm:$0xff] }
  0x24   : > { %383 = vmatpush.msrb.mxu1 %v616_v44  ;;  %264 = vmatpush.msra.mxu0 %v231_v46  ;;  %v606_v5 = vld [vmem:[%s1006_s1 + $0x120] sm:$0xff]  ;;  %v609_v9 = vld [vmem:[%s1006_s1 + $0x130] sm:$0xff]  ;;  %v629_v10 = vld [vmem:[%s1006_s1 + $0x1c8] sm:$0xff] }
  0x25   : > { %326 = vmatpush.msra.mxu2 %v592_v47  ;;  %445 = vmatpush.msrb.mxu3 %v635_v49  ;;  %v647_v11 = vld [vmem:[%s1006_s1 + $0x258] sm:$0xff]  ;;  %v646_v12 = vld [vmem:[%s1006_s1 + $0x250] sm:$0xff]  ;;  %v225_v13 = vld [vmem:[%s215_s4] sm:$0xff] }
  0x26   : > { %384 = vmatpush.msrb.mxu1 %v615_v48  ;;  %265 = vmatpush.msra.mxu0 %v230_v50  ;;  %v645_v14 = vld [vmem:[%s1006_s1 + $0x248] sm:$0xff] }
  0x27   : > { %327 = vmatpush.msra.mxu2 %v591_v51  ;;  %446 = vmatpush.msrb.mxu3 %v634_v53 }
  0x28   : > { %385 = vmatpush.msrb.mxu1 %v614_v52  ;;  %266 = vmatpush.msra.mxu0 %v229_v54 }
  0x29   : > { %328 = vmatpush.msra.mxu2 %v590_v55  ;;  %447 = vmatpush.msrb.mxu3 %v633_v57 }
  0x2a   : > { %386 = vmatpush.msrb.mxu1 %v613_v56  ;;  %628 = vmatmul.msk.f32.vlgmr.msra.gmra.mxu3 %vm250_vm0, %v224_v58 }
  0x2b   : > { %588 = vmatmul.msk.f32.vlgmr.msra.gmra.mxu1 %vm250_vm0, %v224_v58  ;;  %267 = vmatpush.msra.mxu0 %v228_v59 }
  0x2c   : > { %329 = vmatpush.msra.mxu2 %v589_v60  ;;  %387 = vmatpush.msrb.mxu1 %v612_v61 }
  0x2d   : > { %448 = vmatpush.msrb.mxu3 %v632_v62  ;;  %330 = vmatmul.f32.vlgmr.msra.gmra.mxu2 %v223_v63 }
  0x2e   : > { %347 = vmatpush.msrb.mxu2 %v607_v0  ;;  %268 = vmatpush.msra.mxu0 %v227_v1 }
  0x2f   : > { %388 = vmatpush.msrb.mxu1 %v611_v2  ;;  %449 = vmatpush.msrb.mxu3 %v631_v3 }
  0x30   : > { %269 = vmatpush.msra.mxu0 %v226_v4  ;;  %348 = vmatpush.msrb.mxu2 %v606_v5 }
  0x31   : > { %389 = vmatpush.msrb.mxu1 %v610_v6  ;;  %450 = vmatpush.msrb.mxu3 %v630_v7 }
  0x32   : > { %270 = vmatmul.f32.vlgmr.msra.gmra.mxu0 %v223_v63  ;;  %349 = vmatpush.msrb.mxu2 %v605_v8 }
  0x33   : > { %390 = vmatpush.msrb.mxu1 %v609_v9  ;;  %451 = vmatpush.msrb.mxu3 %v629_v10 }
  0x34   : > { %391 = vmatmul.f32.vlgmr.msrb.gmra.mxu1 %v223_v63  ;;  %452 = vmatmul.f32.vlgmr.msrb.gmra.mxu3 %v223_v63 }
  0x35   : > { %608 = vmatmul.msk.f32.vlgmr.msrb.gmra.mxu2 %vm250_vm0, %v224_v58  ;;  %469 = vmatpush.msrb.mxu0 %v647_v11 }
  0x36   : > { %677 = vset.pattern.permute.xlu0 %v702_v15 }
  0x37   : > { %470 = vmatpush.msrb.mxu0 %v646_v12  ;;  %247 = vperm.xlu0 %677, %v225_v13  }
  0x39   : > { %471 = vmatpush.msrb.mxu0 %v645_v14 }
  0x3a   : > { %648 = vmatmul.msk.f32.vlgmr.msrb.gmra.mxu0 %vm250_vm0, %v224_v58 }
  0xa8   : > { %v291_v16 = vpop.f32.mrf.mxu1 }
  0xa9   : > { %v248_v19 = vpop.permute.xlu0 %247 }
  0xad   : > { %v412_v17 = vpop.f32.mrf.mxu3 }
  0xaf   : > { %v271_v20 = vpop.f32.mrf.mxu0 }
  0xb0   : > { %v331_v18 = vpop.f32.mrf.mxu2  ;;  %v272_v22 = vadd.f32 %v271_v20, %v248_v19 }
  0xb1   : > { %v392_v21 = vpop.f32.mrf.mxu1  ;;  %v332_v23 = vadd.f32 %v331_v18, %v248_v19 }
  0xb2   : > { %v393_v24 = vadd.f32 %v392_v21, %v248_v19  ;;  %v292_v27 = vadd.f32 %v291_v16, %v272_v22 }
  0xb4   : > { %v413_v31 = vadd.f32 %v412_v17, %v393_v24 }
  0xb7   : > { %v453_v25 = vpop.f32.mrf.mxu3  ;;  %v473_v30 = vpop.f32.mrf.mxu0 }
  0xb8   : > { %v351_v26 = vpop.f32.mrf.mxu2  ;;  %v454_v28 = vadd.f32 %v453_v25, %v248_v19 }
  0xb9   : > { %v352_v29 = vadd.f32 %v351_v26, %v332_v23 }
  0xba   : > { %v474_v34 = vadd.f32 %v473_v30, %v454_v28 }
  0xbb   : > { %v354_v32 = vmax.f32 %v292_v27, %v352_v29 }
  0xbd   : > { %v415_v33 = vmax.f32 %v354_v32, %v413_v31 }
  0xbf   : > { %v476_v35 = vmax.f32 %v415_v33, %v474_v34 }
  0xc1   : > { %v477_v36 = vmax.f32 %v476_v35, 0.0 }
  0xc3   : > { %478 = vst [vmem:[%s222_s17] sm:$0xff] %v477_v36 }
  0xc4 PF: > { %s13_s14 = sadd.s32 1, %s700_s14   ;;  %s1009_s12 = smov %s696_s13 }
  0xc5   : > { %p10_p5 = scmp.ge.s32.totalorder %s13_s14, 4   ;;  %s1010_s13 = smov %s1012_s15 }
  0xc7   :  { %12 = sbr.rel (!%p10_p5) target bundleno = 2 (0x2), region = 71 }

// kernel: net_forward.5
= control target key start
LH: loop header
LB: loop body
LE: loop exit
PB: predicated region body
PF: predicated region fallthrough
CT: control target
= control target key end

     0   :  { %s620_s1 = inlined_call_operand.vmem [shape: f32[512,128], index: 1, kind: input, shape index: {}]   ;;  %s621_s2 = inlined_call_operand.vmem [shape: f32[1,128], index: 2, kind: input, shape index: {}]   ;;  %s622_s0 = inlined_call_operand.vmem [shape: f32[8,512], index: 0, kind: input, shape index: {}]   ;;  %s623_s3 = inlined_call_operand.vmem [shape: f32[128,128], index: 3, kind: input, shape index: {}]   ;;  %s624_s4 = inlined_call_operand.vmem [shape: f32[1,128], index: 4, kind: input, shape index: {}]   ;;  %s625_s5 = inlined_call_operand.vmem [shape: f32[128,128], index: 5, kind: input, shape index: {}]   ;;  %s626_s6 = inlined_call_operand.vmem [shape: f32[1,128], index: 6, kind: input, shape index: {}]   ;;  %s627_s7 = inlined_call_operand.vmem [shape: f32[8,128], index: 7, kind: output, shape index: {}]  }
   0x1   :  { %v77_v0 = vld [vmem:[%s620_s1 + $0x178] sm:$0xff]  ;;  %v76_v2 = vld [vmem:[%s620_s1 + $0x170] sm:$0xff]  ;;  %v75_v6 = vld [vmem:[%s620_s1 + $0x168] sm:$0xff] }
   0x2   :  { %v45_v1 = vld [vmem:[%s620_s1 + $0x78] sm:$0xff]  ;;  %138 = vmatpush.msra.mxu2 %v77_v0  ;;  %v44_v4 = vld [vmem:[%s620_s1 + $0x70] sm:$0xff]  ;;  %v43_v8 = vld [vmem:[%s620_s1 + $0x68] sm:$0xff] }
   0x3   :  { %98 = vmatpush.msra.mxu0 %v45_v1  ;;  %v93_v3 = vld [vmem:[%s620_s1 + $0x1f8] sm:$0xff]  ;;  %v92_v7 = vld [vmem:[%s620_s1 + $0x1f0] sm:$0xff]  ;;  %v91_v10 = vld [vmem:[%s620_s1 + $0x1e8] sm:$0xff] }
   0x4   :  { %v61_v5 = vld [vmem:[%s620_s1 + $0xf8] sm:$0xff]  ;;  %158 = vmatpush.msra.mxu3 %v93_v3  ;;  %139 = vmatpush.msra.mxu2 %v76_v2  ;;  %v60_v9 = vld [vmem:[%s620_s1 + $0xf0] sm:$0xff]  ;;  %v74_v11 = vld [vmem:[%s620_s1 + $0x160] sm:$0xff] }
   0x5   :  { %118 = vmatpush.msra.mxu1 %v61_v5  ;;  %99 = vmatpush.msra.mxu0 %v44_v4  ;;  %v42_v12 = vld [vmem:[%s620_s1 + $0x60] sm:$0xff]  ;;  %v59_v13 = vld [vmem:[%s620_s1 + $0xe8] sm:$0xff]  ;;  %v73_v16 = vld [vmem:[%s620_s1 + $0x158] sm:$0xff] }
   0x6   :  { %159 = vmatpush.msra.mxu3 %v92_v7  ;;  %140 = vmatpush.msra.mxu2 %v75_v6  ;;  %v90_v14 = vld [vmem:[%s620_s1 + $0x1e0] sm:$0xff]  ;;  %v41_v17 = vld [vmem:[%s620_s1 + $0x58] sm:$0xff]  ;;  %v72_v20 = vld [vmem:[%s620_s1 + $0x150] sm:$0xff] }
   0x7   :  { %119 = vmatpush.msra.mxu1 %v60_v9  ;;  %100 = vmatpush.msra.mxu0 %v43_v8  ;;  %v58_v15 = vld [vmem:[%s620_s1 + $0xe0] sm:$0xff]  ;;  %v89_v18 = vld [vmem:[%s620_s1 + $0x1d8] sm:$0xff]  ;;  %v40_v21 = vld [vmem:[%s620_s1 + $0x50] sm:$0xff] }
   0x8   :  { %160 = vmatpush.msra.mxu3 %v91_v10  ;;  %141 = vmatpush.msra.mxu2 %v74_v11  ;;  %v57_v19 = vld [vmem:[%s620_s1 + $0xd8] sm:$0xff]  ;;  %v88_v22 = vld [vmem:[%s620_s1 + $0x1d0] sm:$0xff]  ;;  %v71_v24 = vld [vmem:[%s620_s1 + $0x148] sm:$0xff] }
   0x9   :  { %120 = vmatpush.msra.mxu1 %v59_v13  ;;  %101 = vmatpush.msra.mxu0 %v42_v12  ;;  %v56_v23 = vld [vmem:[%s620_s1 + $0xd0] sm:$0xff]  ;;  %v39_v25 = vld [vmem:[%s620_s1 + $0x48] sm:$0xff]  ;;  %v70_v28 = vld [vmem:[%s620_s1 + $0x140] sm:$0xff] }
   0xa   :  { %161 = vmatpush.msra.mxu3 %v90_v14  ;;  %142 = vmatpush.msra.mxu2 %v73_v16  ;;  %v87_v26 = vld [vmem:[%s620_s1 + $0x1c8] sm:$0xff]  ;;  %v38_v29 = vld [vmem:[%s620_s1 + $0x40] sm:$0xff]  ;;  %v69_v32 = vld [vmem:[%s620_s1 + $0x138] sm:$0xff] }
   0xb   :  { %121 = vmatpush.msra.mxu1 %v58_v15  ;;  %102 = vmatpush.msra.mxu0 %v41_v17  ;;  %v55_v27 = vld [vmem:[%s620_s1 + $0xc8] sm:$0xff]  ;;  %v86_v30 = vld [vmem:[%s620_s1 + $0x1c0] sm:$0xff]  ;;  %v37_v33 = vld [vmem:[%s620_s1 + $0x38] sm:$0xff] }
   0xc   :  { %162 = vmatpush.msra.mxu3 %v89_v18  ;;  %143 = vmatpush.msra.mxu2 %v72_v20  ;;  %v54_v31 = vld [vmem:[%s620_s1 + $0xc0] sm:$0xff]  ;;  %v85_v34 = vld [vmem:[%s620_s1 + $0x1b8] sm:$0xff]  ;;  %v68_v36 = vld [vmem:[%s620_s1 + $0x130] sm:$0xff] }
   0xd   :  { %122 = vmatpush.msra.mxu1 %v57_v19  ;;  %103 = vmatpush.msra.mxu0 %v40_v21  ;;  %v53_v35 = vld [vmem:[%s620_s1 + $0xb8] sm:$0xff]  ;;  %v36_v37 = vld [vmem:[%s620_s1 + $0x30] sm:$0xff]  ;;  %v67_v40 = vld [vmem:[%s620_s1 + $0x128] sm:$0xff] }
   0xe   :  { %163 = vmatpush.msra.mxu3 %v88_v22  ;;  %144 = vmatpush.msra.mxu2 %v71_v24  ;;  %v84_v38 = vld [vmem:[%s620_s1 + $0x1b0] sm:$0xff]  ;;  %v35_v41 = vld [vmem:[%s620_s1 + $0x28] sm:$0xff]  ;;  %v66_v44 = vld [vmem:[%s620_s1 + $0x120] sm:$0xff] }
   0xf   :  { %123 = vmatpush.msra.mxu1 %v56_v23  ;;  %104 = vmatpush.msra.mxu0 %v39_v25  ;;  %v52_v39 = vld [vmem:[%s620_s1 + $0xb0] sm:$0xff]  ;;  %v83_v42 = vld [vmem:[%s620_s1 + $0x1a8] sm:$0xff]  ;;  %v34_v45 = vld [vmem:[%s620_s1 + $0x20] sm:$0xff] }
  0x10   :  { %164 = vmatpush.msra.mxu3 %v87_v26  ;;  %145 = vmatpush.msra.mxu2 %v70_v28  ;;  %v51_v43 = vld [vmem:[%s620_s1 + $0xa8] sm:$0xff]  ;;  %v82_v46 = vld [vmem:[%s620_s1 + $0x1a0] sm:$0xff]  ;;  %v65_v48 = vld [vmem:[%s620_s1 + $0x118] sm:$0xff] }
  0x11   :  { %124 = vmatpush.msra.mxu1 %v55_v27  ;;  %105 = vmatpush.msra.mxu0 %v38_v29  ;;  %v50_v47 = vld [vmem:[%s620_s1 + $0xa0] sm:$0xff]  ;;  %v33_v49 = vld [vmem:[%s620_s1 + $0x18] sm:$0xff]  ;;  %v64_v52 = vld [vmem:[%s620_s1 + $0x110] sm:$0xff] }
  0x12   :  { %165 = vmatpush.msra.mxu3 %v86_v30  ;;  %146 = vmatpush.msra.mxu2 %v69_v32  ;;  %v81_v50 = vld [vmem:[%s620_s1 + $0x198] sm:$0xff]  ;;  %v32_v53 = vld [vmem:[%s620_s1 + $0x10] sm:$0xff]  ;;  %v63_v56 = vld [vmem:[%s620_s1 + $0x108] sm:$0xff] }
  0x13   :  { %125 = vmatpush.msra.mxu1 %v54_v31  ;;  %106 = vmatpush.msra.mxu0 %v37_v33  ;;  %v49_v51 = vld [vmem:[%s620_s1 + $0x98] sm:$0xff]  ;;  %v80_v54 = vld [vmem:[%s620_s1 + $0x190] sm:$0xff]  ;;  %v31_v57 = vld [vmem:[%s620_s1 + $0x8] sm:$0xff] }
  0x14   :  { %166 = vmatpush.msra.mxu3 %v85_v34  ;;  %147 = vmatpush.msra.mxu2 %v68_v36  ;;  %v48_v55 = vld [vmem:[%s620_s1 + $0x90] sm:$0xff]  ;;  %v79_v58 = vld [vmem:[%s620_s1 + $0x188] sm:$0xff]  ;;  %v62_v60 = vld [vmem:[%s620_s1 + $0x100] sm:$0xff] }
  0x15   :  { %126 = vmatpush.msra.mxu1 %v53_v35  ;;  %107 = vmatpush.msra.mxu0 %v36_v37  ;;  %v47_v59 = vld [vmem:[%s620_s1 + $0x88] sm:$0xff]  ;;  %v30_v61 = vld [vmem:[%s620_s1] sm:$0xff]  ;;  %v28_v62 = vld [vmem:[%s622_s0 + $0x10] sm:$0xff] }
  0x16   :  { %167 = vmatpush.msra.mxu3 %v84_v38  ;;  %148 = vmatpush.msra.mxu2 %v67_v40  ;;  %v78_v63 = vld [vmem:[%s620_s1 + $0x180] sm:$0xff]  ;;  %v29_v1 = vld [vmem:[%s622_s0 + $0x18] sm:$0xff]  ;;  %v27_v4 = vld [vmem:[%s622_s0 + $0x8] sm:$0xff] }
  0x17   :  { %127 = vmatpush.msra.mxu1 %v52_v39  ;;  %108 = vmatpush.msra.mxu0 %v35_v41  ;;  %v26_v0 = vld [vmem:[%s622_s0] sm:$0xff]  ;;  %v194_v3 = vld [vmem:[%s623_s3 + $0x78] sm:$0xff]  ;;  %v193_v5 = vld [vmem:[%s623_s3 + $0x70] sm:$0xff] }
  0x18   :  { %168 = vmatpush.msra.mxu3 %v83_v42  ;;  %149 = vmatpush.msra.mxu2 %v66_v44  ;;  %v46_v2 = vld [vmem:[%s620_s1 + $0x80] sm:$0xff]  ;;  %v192_v6 = vld [vmem:[%s623_s3 + $0x68] sm:$0xff]  ;;  %v190_v8 = vld [vmem:[%s623_s3 + $0x58] sm:$0xff] }
  0x19   :  { %128 = vmatpush.msra.mxu1 %v51_v43  ;;  %109 = vmatpush.msra.mxu0 %v34_v45  ;;  %v191_v7 = vld [vmem:[%s623_s3 + $0x60] sm:$0xff]  ;;  %v189_v9 = vld [vmem:[%s623_s3 + $0x50] sm:$0xff]  ;;  %v188_v10 = vld [vmem:[%s623_s3 + $0x48] sm:$0xff] }
  0x1a   :  { %169 = vmatpush.msra.mxu3 %v82_v46  ;;  %150 = vmatpush.msra.mxu2 %v65_v48  ;;  %v187_v11 = vld [vmem:[%s623_s3 + $0x40] sm:$0xff]  ;;  %v186_v12 = vld [vmem:[%s623_s3 + $0x38] sm:$0xff]  ;;  %v185_v13 = vld [vmem:[%s623_s3 + $0x30] sm:$0xff] }
  0x1b   :  { %129 = vmatpush.msra.mxu1 %v50_v47  ;;  %110 = vmatpush.msra.mxu0 %v33_v49  ;;  %v184_v14 = vld [vmem:[%s623_s3 + $0x28] sm:$0xff]  ;;  %v183_v15 = vld [vmem:[%s623_s3 + $0x20] sm:$0xff]  ;;  %v182_v16 = vld [vmem:[%s623_s3 + $0x18] sm:$0xff] }
  0x1c   :  { %170 = vmatpush.msra.mxu3 %v81_v50  ;;  %151 = vmatpush.msra.mxu2 %v64_v52  ;;  %v181_v17 = vld [vmem:[%s623_s3 + $0x10] sm:$0xff]  ;;  %v180_v18 = vld [vmem:[%s623_s3 + $0x8] sm:$0xff]  ;;  %v179_v19 = vld [vmem:[%s623_s3] sm:$0xff] }
  0x1d   :  { %130 = vmatpush.msra.mxu1 %v49_v51  ;;  %111 = vmatpush.msra.mxu0 %v32_v53  ;;  %v235_v20 = vld [vmem:[%s625_s5 + $0x78] sm:$0xff]  ;;  %v234_v21 = vld [vmem:[%s625_s5 + $0x70] sm:$0xff]  ;;  %v233_v22 = vld [vmem:[%s625_s5 + $0x68] sm:$0xff] }
  0x1e   :  { %171 = vmatpush.msra.mxu3 %v80_v54  ;;  %152 = vmatpush.msra.mxu2 %v63_v56  ;;  %v232_v23 = vld [vmem:[%s625_s5 + $0x60] sm:$0xff]  ;;  %v231_v24 = vld [vmem:[%s625_s5 + $0x58] sm:$0xff]  ;;  %v230_v25 = vld [vmem:[%s625_s5 + $0x50] sm:$0xff] }
  0x1f   :  { %131 = vmatpush.msra.mxu1 %v48_v55  ;;  %112 = vmatpush.msra.mxu0 %v31_v57  ;;  %v229_v26 = vld [vmem:[%s625_s5 + $0x48] sm:$0xff]  ;;  %v228_v27 = vld [vmem:[%s625_s5 + $0x40] sm:$0xff]  ;;  %v227_v28 = vld [vmem:[%s625_s5 + $0x38] sm:$0xff] }
  0x20   :  { %172 = vmatpush.msra.mxu3 %v79_v58  ;;  %153 = vmatpush.msra.mxu2 %v62_v60  ;;  %v226_v29 = vld [vmem:[%s625_s5 + $0x30] sm:$0xff]  ;;  %v265_v30 = vld [vmem:[%s621_s2] ss:$0 sm:$0xff]  ;;  %v225_v31 = vld [vmem:[%s625_s5 + $0x28] sm:$0xff] }
  0x21   :  { %132 = vmatpush.msra.mxu1 %v47_v59  ;;  %113 = vmatpush.msra.mxu0 %v30_v61  ;;  %v224_v33 = vld [vmem:[%s625_s5 + $0x20] sm:$0xff]  ;;  %v223_v36 = vld [vmem:[%s625_s5 + $0x18] sm:$0xff]  ;;  %v222_v43 = vld [vmem:[%s625_s5 + $0x10] sm:$0xff] }
  0x22   :  { %154 = vmatmul.f32.vlgmr.msra.gmra.mxu2 %v28_v62  ;;  %173 = vmatpush.msra.mxu3 %v78_v63  ;;  %v221_v44 = vld [vmem:[%s625_s5 + $0x8] sm:$0xff]  ;;  %v220_v45 = vld [vmem:[%s625_s5] sm:$0xff] }
  0x23   :  { %114 = vmatmul.f32.vlgmr.msra.gmra.mxu0 %v26_v0  ;;  %174 = vmatmul.f32.vlgmr.msra.gmra.mxu3 %v29_v1  ;;  %v266_v46 = vld [vmem:[%s624_s4] ss:$0 sm:$0xff] }
  0x24   :  { %133 = vmatpush.msra.mxu1 %v46_v2  ;;  %199 = vmatpush.msrb.mxu0 %v194_v3  ;;  %v267_v50 = vld [vmem:[%s626_s6] ss:$0 sm:$0xff] }
  0x25   :  { %134 = vmatmul.f32.vlgmr.msra.gmra.mxu1 %v27_v4 }
  0x26   :  { %200 = vmatpush.msrb.mxu0 %v193_v5  ;;  %240 = vmatpush.msrb.mxu1 %v235_v20 }
  0x28   :  { %201 = vmatpush.msrb.mxu0 %v192_v6  ;;  %241 = vmatpush.msrb.mxu1 %v234_v21 }
  0x2a   :  { %202 = vmatpush.msrb.mxu0 %v191_v7  ;;  %242 = vmatpush.msrb.mxu1 %v233_v22 }
  0x2c   :  { %203 = vmatpush.msrb.mxu0 %v190_v8  ;;  %243 = vmatpush.msrb.mxu1 %v232_v23 }
  0x2e   :  { %204 = vmatpush.msrb.mxu0 %v189_v9  ;;  %244 = vmatpush.msrb.mxu1 %v231_v24 }
  0x30   :  { %205 = vmatpush.msrb.mxu0 %v188_v10  ;;  %245 = vmatpush.msrb.mxu1 %v230_v25 }
  0x32   :  { %206 = vmatpush.msrb.mxu0 %v187_v11  ;;  %246 = vmatpush.msrb.mxu1 %v229_v26 }
  0x34   :  { %207 = vmatpush.msrb.mxu0 %v186_v12  ;;  %247 = vmatpush.msrb.mxu1 %v228_v27 }
  0x36   :  { %208 = vmatpush.msrb.mxu0 %v185_v13  ;;  %248 = vmatpush.msrb.mxu1 %v227_v28 }
  0x38   :  { %209 = vmatpush.msrb.mxu0 %v184_v14  ;;  %249 = vmatpush.msrb.mxu1 %v226_v29 }
  0x3a   :  { %210 = vmatpush.msrb.mxu0 %v183_v15  ;;  %250 = vmatpush.msrb.mxu1 %v225_v31 }
  0x3c   :  { %211 = vmatpush.msrb.mxu0 %v182_v16  ;;  %251 = vmatpush.msrb.mxu1 %v224_v33 }
  0x3e   :  { %212 = vmatpush.msrb.mxu0 %v181_v17  ;;  %252 = vmatpush.msrb.mxu1 %v223_v36 }
  0x40   :  { %213 = vmatpush.msrb.mxu0 %v180_v18  ;;  %253 = vmatpush.msrb.mxu1 %v222_v43 }
  0x42   :  { %214 = vmatpush.msrb.mxu0 %v179_v19  ;;  %254 = vmatpush.msrb.mxu1 %v221_v44 }
  0x44   :  { %255 = vmatpush.msrb.mxu1 %v220_v45 }
  0xa0   :  { %v115_v32 = vpop.f32.mrf.mxu0 }
  0xa1   :  { %v116_v34 = vadd.f32 %v265_v30, %v115_v32 }
  0xa2   :  { %v135_v35 = vpop.f32.mrf.mxu1 }
  0xa3   :  { %v136_v37 = vadd.f32 %v135_v35, %v116_v34 }
  0xa5   :  { %v155_v38 = vpop.f32.mrf.mxu2 }
  0xa6   :  { %v156_v39 = vadd.f32 %v155_v38, %v136_v37  ;;  %v175_v40 = vpop.f32.mrf.mxu3 }
  0xa8   :  { %v176_v41 = vadd.f32 %v175_v40, %v156_v39 }
  0xaa   :  { %v178_v42 = vmax.f32 %v176_v41, 0.0 }
  0xac   :  { %215 = vmatmul.f32.vlgmr.msrb.gmra.mxu0 %v178_v42 }
 0x129   :  { %v216_v47 = vpop.f32.mrf.mxu0 }
 0x12a   :  { %v217_v48 = vadd.f32 %v266_v46, %v216_v47 }
 0x12c   :  { %v219_v49 = vmax.f32 %v217_v48, 0.0 }
 0x12e   :  { %256 = vmatmul.f32.vlgmr.msrb.gmra.mxu1 %v219_v49 }
 0x1ab   :  { %v257_v51 = vpop.f32.mrf.mxu1 }
 0x1ac   :  { %v258_v52 = vadd.f32 %v267_v50, %v257_v51 }
 0x1ae   :  { %260 = vst [vmem:[%s627_s7] sm:$0xff] %v258_v52 }

</bundles_post_ra>
